<compile_context>
chip_gen: v5e
topology: v5e:2x2
jax: 0.10.0
libtpu: 0.0.40
codegen_flags: <defaults>
</compile_context>

<pallas_src>
import jax
import jax.numpy as jnp
from jax.experimental import pallas as pl
from jax.experimental.pallas import tpu as pltpu


def _vmem():
    return pl.BlockSpec(memory_space=pltpu.MemorySpace.VMEM)


# ---------------------------------------------------------------------------
# Fully fused forward kernel.
# ---------------------------------------------------------------------------
def fused_forward_kernel(x_ref, xlen_ref, y0_ref, y1_ref,
                         w_sim_inx_ref, w_sim_iny_ref, b_sim_in_ref,
                         w_sim_rec_ref, b_sim_rec_ref,
                         w_sim_out_ref, b_sim_out_ref,
                         w_cal_x0_ref, w_cal_yh_ref, b_cal_ref,
                         w1_ref, b1_ref, w2_ref, b2_ref,
                         seq_ref, out_ref):
    B, T, Dx = x_ref.shape
    H = w_sim_out_ref.shape[0]
    O = w_sim_out_ref.shape[1]

    x = x_ref[...]                                             # (B, T, Dx)

    # Hoist weight loads / bias broadcasts out of the (unrolled) time loop.
    w_sim_iny = w_sim_iny_ref[...]                             # (2O, H)
    w_sim_rec = w_sim_rec_ref[...]                             # (2H, H)
    w_sim_out = w_sim_out_ref[...]                             # (H, O)
    w_cal_yh = w_cal_yh_ref[...]                               # (O+H, H)
    b_sim_in = jnp.broadcast_to(b_sim_in_ref[...], (B, H))
    b_sim_rec = jnp.broadcast_to(b_sim_rec_ref[...], (B, H))
    b_sim_out = jnp.broadcast_to(b_sim_out_ref[...], (B, O))
    b_cal = jnp.broadcast_to(b_cal_ref[...], (B, H))

    # Recurrence-independent input projections: computed once for all T,
    # outside the serial loop.
    #   simnet x-part: one batched matmul (B,T,Dx)@(Dx,H) -> (B,T,H)
    w_inx_b = jnp.broadcast_to(w_sim_inx_ref[...][None], (B, Dx, H))
    xin = jnp.einsum('btd,bdh->bth', x, w_inx_b,
                     preferred_element_type=jnp.float32)       # (B, T, H)
    #   cal-RNN x0-part: scalar-per-(b,t) outer product with the x0 weight row
    x0in = x[:, :, 0:1] * w_cal_x0_ref[...].reshape(1, 1, H)   # (B, T, H)

    # pack_padded_sequence semantics: latch the cal-RNN state at the last
    # valid step (x_len - 1) of each batch row.
    # TODO(synk): the literal `out[:, x_len]` in the reference reads the
    # zero-padded row of pad_packed_sequence (all zeros for x_len < T); the
    # last-valid-state interpretation is used here instead.
    latch_idx = jnp.clip(xlen_ref[...] - 1, 0, T - 1)          # (B, 1) int32

    h_sim = jnp.zeros((B, H), jnp.float32)
    h_cal = jnp.zeros((B, H), jnp.float32)
    latched = jnp.zeros((B, H), jnp.float32)
    y1 = y1_ref[...]                                           # y_{t-1}
    y2 = y0_ref[...]                                           # y_{t-2}
    ys = []

    # Static T: fully unrolled so the scheduler can interleave MXU/EUP work
    # across iterations of the serial recurrence.
    for t in range(T):
        # simnet (MyRNN_skip): input Linear+tanh. x-part precomputed; only
        # the recurrent [y_{t-1}, y_{t-2}] matmul stays in the serial chain.
        u = jnp.tanh(
            xin[:, t, :]
            + jnp.dot(jnp.concatenate([y1, y2], axis=-1), w_sim_iny,
                      preferred_element_type=jnp.float32)
            + b_sim_in)
        # Elman cell: fused matmul over [u, h]
        h_sim = jnp.tanh(
            jnp.dot(jnp.concatenate([u, h_sim], axis=-1), w_sim_rec,
                    preferred_element_type=jnp.float32) + b_sim_rec)
        # output layer + skip connection on previous output
        y_new = y1 + jnp.dot(h_sim, w_sim_out,
                             preferred_element_type=jnp.float32) + b_sim_out

        # cal RNN (nn.RNN, tanh): x0-part precomputed; fused matmul over
        # the recurrent [seq_t, h] part only.
        h_cal = jnp.tanh(
            x0in[:, t, :]
            + jnp.dot(jnp.concatenate([y_new, h_cal], axis=-1), w_cal_yh,
                      preferred_element_type=jnp.float32)
            + b_cal)

        # latch the hidden state at the last valid step of each sequence
        latched = jnp.where(latch_idx == t, h_cal, latched)

        ys.append(y_new)
        y2 = y1
        y1 = y_new

    # Single store of the full sequence instead of T narrow per-step stores.
    seq_ref[...] = jnp.stack(ys, axis=1)                       # (B, T, O)

    # outlayer: cat((latched_state, x[:, 0, 1:]), -1) -> Linear -> ReLU -> Linear
    feat = jnp.concatenate([latched, x[:, 0, 1:]], axis=-1)
    h1 = jnp.maximum(
        jnp.dot(feat, w1_ref[...], preferred_element_type=jnp.float32)
        + b1_ref[...], 0.0)
    out_ref[...] = (jnp.dot(h1, w2_ref[...], preferred_element_type=jnp.float32)
                    + b2_ref[...])


# ---------------------------------------------------------------------------
# Parameter construction (deterministic, synthetic weights, pre-fused).
# NOTE: params contain only arrays (no python ints) so they can be passed
# straight through jax.jit.
# ---------------------------------------------------------------------------
def init_params(dx, hidden, out_size, last_size, key):
    ks = jax.random.split(key, 10)
    u = lambda k, shape, fan: jax.random.uniform(
        k, shape, jnp.float32, -1.0 / jnp.sqrt(fan), 1.0 / jnp.sqrt(fan))
    sim_in = dx + 2 * out_size                     # simnet "input_size"

    winx = u(ks[0], (dx, hidden), sim_in)
    winy1 = u(ks[1], (out_size, hidden), sim_in)
    winy2 = u(ks[2], (out_size, hidden), sim_in)
    wih = u(ks[3], (hidden, hidden), hidden)
    whh = u(ks[4], (hidden, hidden), hidden)
    wout = u(ks[5], (hidden, out_size), hidden)
    cal_wih = u(ks[6], (out_size + 1, hidden), hidden)   # input = [seq_t, x0]
    cal_whh = u(ks[7], (hidden, hidden), hidden)

    return {
        # simnet input layer, split into the hoistable x-part and the
        # recurrent [y_{t-1}, y_{t-2}] part
        "w_sim_inx": winx,                                        # (Dx, H)
        "w_sim_iny": jnp.concatenate([winy1, winy2], axis=0),     # (2O, H)
        "b_sim_in": jnp.zeros((1, hidden), jnp.float32),
        # simnet Elman cell: fused weight over [u, h]
        "w_sim_rec": jnp.concatenate([wih, whh], axis=0),
        "b_sim_rec": jnp.zeros((1, hidden), jnp.float32),
        "w_sim_out": wout,
        "b_sim_out": jnp.zeros((1, out_size), jnp.float32),
        # cal RNN (nn.RNN(output_size + 1, hidden)): x0 row hoisted, the rest
        # fused over [seq_t, h]
        "w_cal_x0": cal_wih[out_size:out_size + 1],               # (1, H)
        "w_cal_yh": jnp.concatenate([cal_wih[:out_size], cal_whh], axis=0),
        "b_cal": jnp.zeros((1, hidden), jnp.float32),
        # outlayer: NeuralNet(hidden + dx - 1, hidden, last_size)
        "out_w1": u(ks[8], (hidden + dx - 1, hidden), hidden + dx - 1),
        "out_b1": jnp.zeros((1, hidden), jnp.float32),
        "out_w2": u(ks[9], (hidden, last_size), hidden),
        "out_b2": jnp.zeros((1, last_size), jnp.float32),
    }


# ---------------------------------------------------------------------------
# Forward pass (my_network.forward equivalent).
# x: (B, T, Dx), x_len: (B,) int32, y_0 / y_1: (B, output_size)
# returns (seq (B, T, output_size), out (B, last_size))
# ---------------------------------------------------------------------------
def my_network_forward(params, x, x_len, y_0, y_1):
    B, T, Dx = x.shape
    H, O = params["w_sim_out"].shape       # (hidden, output_size) - static ints
    LAST = params["out_w2"].shape[1]

    xlen = x_len.astype(jnp.int32).reshape(B, 1)

    # Advisory cost hint for the XLA scheduler.
    flops = (T * 2 * B * (2 * O * H + 2 * H * H + H * O + (O + H) * H)
             + 2 * B * T * Dx * H + B * T * H
             + 2 * B * ((H + Dx - 1) * H + H * LAST))
    transc = T * 3 * B * H
    bytes_acc = 4 * (x.size + xlen.size + y_0.size + y_1.size
                     + sum(int(v.size) for v in params.values())
                     + B * T * O + B * LAST)

    seq, out = pl.pallas_call(
        fused_forward_kernel,
        out_shape=(jax.ShapeDtypeStruct((B, T, O), jnp.float32),
                   jax.ShapeDtypeStruct((B, LAST), jnp.float32)),
        in_specs=[_vmem()] * 18,
        out_specs=(_vmem(), _vmem()),
        cost_estimate=pl.CostEstimate(flops=flops, transcendentals=transc,
                                      bytes_accessed=bytes_acc),
    )(x, xlen, y_0, y_1,
      params["w_sim_inx"], params["w_sim_iny"], params["b_sim_in"],
      params["w_sim_rec"], params["b_sim_rec"],
      params["w_sim_out"], params["b_sim_out"],
      params["w_cal_x0"], params["w_cal_yh"], params["b_cal"],
      params["out_w1"], params["out_b1"],
      params["out_w2"], params["out_b2"])
    return seq, out


if __name__ == "__main__":
    # Small shapes consistent with the module.
    B, T, Dx = 2, 8, 4          # x feature dim
    H = 32                      # hidden_size
    O = 3                       # output_size (y feature dim)
    LAST = 6                    # last_size

    key = jax.random.PRNGKey(0)
    kx, ky0, ky1 = jax.random.split(key, 3)
    x = jax.random.normal(kx, (B, T, Dx), jnp.float32)
    y_0 = jax.random.normal(ky0, (B, O), jnp.float32)
    y_1 = jax.random.normal(ky1, (B, O), jnp.float32)
    x_len = jnp.array([7, 6], jnp.int32)   # descending, as pack_padded requires

    params = init_params(Dx, H, O, LAST, jax.random.PRNGKey(42))

    fwd = jax.jit(my_network_forward)
    seq, out = fwd(params, x, x_len, y_0, y_1)
    jax.block_until_ready((seq, out))

    assert seq.shape == (B, T, O), seq.shape
    assert out.shape == (B, LAST), out.shape
    print("KERNEL_OK")
</pallas_src>

<mosaic_0001>
module attributes {stable_mosaic.version = 11 : i64} {
  func.func @fused_forward_kernel(%arg0: memref<2x8x4xf32, #tpu.memory_space<vmem>>, %arg1: memref<2x1xi32, #tpu.memory_space<vmem>>, %arg2: memref<2x3xf32, #tpu.memory_space<vmem>>, %arg3: memref<2x3xf32, #tpu.memory_space<vmem>>, %arg4: memref<4x32xf32, #tpu.memory_space<vmem>>, %arg5: memref<6x32xf32, #tpu.memory_space<vmem>>, %arg6: memref<1x32xf32, #tpu.memory_space<vmem>>, %arg7: memref<64x32xf32, #tpu.memory_space<vmem>>, %arg8: memref<1x32xf32, #tpu.memory_space<vmem>>, %arg9: memref<32x3xf32, #tpu.memory_space<vmem>>, %arg10: memref<1x3xf32, #tpu.memory_space<vmem>>, %arg11: memref<1x32xf32, #tpu.memory_space<vmem>>, %arg12: memref<35x32xf32, #tpu.memory_space<vmem>>, %arg13: memref<1x32xf32, #tpu.memory_space<vmem>>, %arg14: memref<35x32xf32, #tpu.memory_space<vmem>>, %arg15: memref<1x32xf32, #tpu.memory_space<vmem>>, %arg16: memref<32x6xf32, #tpu.memory_space<vmem>>, %arg17: memref<1x6xf32, #tpu.memory_space<vmem>>, %arg18: memref<2x8x3xf32, #tpu.memory_space<vmem>>, %arg19: memref<2x6xf32, #tpu.memory_space<vmem>>) attributes {dimension_semantics = [], scalar_prefetch = 0 : i64, scratch_operands = 0 : i64, tpu.core_type = #tpu.core_type<tc>} {
    %c0 = arith.constant 0 : index
    %c0_0 = arith.constant 0 : index
    %c0_1 = arith.constant 0 : index
    %0 = vector.load %arg0[%c0, %c0_0, %c0_1] : memref<2x8x4xf32, #tpu.memory_space<vmem>>, vector<2x8x4xf32>
    %c0_2 = arith.constant 0 : index
    %c0_3 = arith.constant 0 : index
    %1 = vector.load %arg5[%c0_2, %c0_3] : memref<6x32xf32, #tpu.memory_space<vmem>>, vector<6x32xf32>
    %c0_4 = arith.constant 0 : index
    %c0_5 = arith.constant 0 : index
    %2 = vector.load %arg7[%c0_4, %c0_5] : memref<64x32xf32, #tpu.memory_space<vmem>>, vector<64x32xf32>
    %c0_6 = arith.constant 0 : index
    %c0_7 = arith.constant 0 : index
    %3 = vector.load %arg9[%c0_6, %c0_7] : memref<32x3xf32, #tpu.memory_space<vmem>>, vector<32x3xf32>
    %c0_8 = arith.constant 0 : index
    %c0_9 = arith.constant 0 : index
    %4 = vector.load %arg12[%c0_8, %c0_9] : memref<35x32xf32, #tpu.memory_space<vmem>>, vector<35x32xf32>
    %c0_10 = arith.constant 0 : index
    %c0_11 = arith.constant 0 : index
    %5 = vector.load %arg6[%c0_10, %c0_11] : memref<1x32xf32, #tpu.memory_space<vmem>>, vector<1x32xf32>
    %6 = vector.shape_cast %5 : vector<1x32xf32> to vector<1x32xf32>
    %7 = vector.broadcast %6 : vector<1x32xf32> to vector<2x32xf32>
    %c0_12 = arith.constant 0 : index
    %c0_13 = arith.constant 0 : index
    %8 = vector.load %arg8[%c0_12, %c0_13] : memref<1x32xf32, #tpu.memory_space<vmem>>, vector<1x32xf32>
    %9 = vector.shape_cast %8 : vector<1x32xf32> to vector<1x32xf32>
    %10 = vector.broadcast %9 : vector<1x32xf32> to vector<2x32xf32>
    %c0_14 = arith.constant 0 : index
    %c0_15 = arith.constant 0 : index
    %11 = vector.load %arg10[%c0_14, %c0_15] : memref<1x3xf32, #tpu.memory_space<vmem>>, vector<1x3xf32>
    %12 = vector.shape_cast %11 : vector<1x3xf32> to vector<1x3xf32>
    %13 = vector.broadcast %12 : vector<1x3xf32> to vector<2x3xf32>
    %c0_16 = arith.constant 0 : index
    %c0_17 = arith.constant 0 : index
    %14 = vector.load %arg13[%c0_16, %c0_17] : memref<1x32xf32, #tpu.memory_space<vmem>>, vector<1x32xf32>
    %15 = vector.shape_cast %14 : vector<1x32xf32> to vector<1x32xf32>
    %16 = vector.broadcast %15 : vector<1x32xf32> to vector<2x32xf32>
    %c0_18 = arith.constant 0 : index
    %c0_19 = arith.constant 0 : index
    %17 = vector.load %arg4[%c0_18, %c0_19] : memref<4x32xf32, #tpu.memory_space<vmem>>, vector<4x32xf32>
    %18 = vector.shape_cast %17 : vector<4x32xf32> to vector<1x4x32xf32>
    %19 = vector.shape_cast %18 : vector<1x4x32xf32> to vector<1x4x32xf32>
    %20 = vector.broadcast %19 : vector<1x4x32xf32> to vector<2x4x32xf32>
    "tpu.trace_start"() <{level = 10 : i32, message = "btd,bdh->bth"}> : () -> ()
    %cst = arith.constant dense<0.000000e+00> : vector<2x8x32xf32>
    %21 = tpu.matmul %0, %20, %cst {dimension_numbers = #tpu.dot_dimension_numbers<[2], [1], [1], [2], [0, 0, 0, 1, 1, 2], [0], [0]>} : vector<2x8x4xf32>, vector<2x4x32xf32>, vector<2x8x32xf32> -> vector<2x8x32xf32>
    "tpu.trace_stop"() : () -> ()
    %22 = vector.extract_strided_slice %0 {offsets = [0, 0, 0], sizes = [2, 8, 1], strides = [1, 1, 1]} : vector<2x8x4xf32> to vector<2x8x1xf32>
    %c0_20 = arith.constant 0 : index
    %c0_21 = arith.constant 0 : index
    %23 = vector.load %arg11[%c0_20, %c0_21] : memref<1x32xf32, #tpu.memory_space<vmem>>, vector<1x32xf32>
    %24 = vector.shape_cast %23 : vector<1x32xf32> to vector<1x1x32xf32>
    %25 = vector.broadcast %22 : vector<2x8x1xf32> to vector<2x8x32xf32>
    %26 = vector.broadcast %24 : vector<1x1x32xf32> to vector<2x8x32xf32>
    %27 = arith.mulf %25, %26 : vector<2x8x32xf32>
    %c0_22 = arith.constant 0 : index
    %c0_23 = arith.constant 0 : index
    %28 = vector.load %arg1[%c0_22, %c0_23] : memref<2x1xi32, #tpu.memory_space<vmem>>, vector<2x1xi32>
    %c1_i32 = arith.constant 1 : i32
    %29 = vector.broadcast %c1_i32 : i32 to vector<2x1xi32>
    %30 = arith.subi %28, %29 : vector<2x1xi32>
    %c0_i32 = arith.constant 0 : i32
    %c7_i32 = arith.constant 7 : i32
    %31 = vector.broadcast %c0_i32 : i32 to vector<2x1xi32>
    %32 = arith.maxsi %31, %30 : vector<2x1xi32>
    %33 = vector.broadcast %c7_i32 : i32 to vector<2x1xi32>
    %34 = arith.minsi %33, %32 : vector<2x1xi32>
    %cst_24 = arith.constant 0.000000e+00 : f32
    %35 = vector.broadcast %cst_24 : f32 to vector<2x32xf32>
    %cst_25 = arith.constant 0.000000e+00 : f32
    %36 = vector.broadcast %cst_25 : f32 to vector<2x32xf32>
    %cst_26 = arith.constant 0.000000e+00 : f32
    %37 = vector.broadcast %cst_26 : f32 to vector<2x32xf32>
    %c0_27 = arith.constant 0 : index
    %c0_28 = arith.constant 0 : index
    %38 = vector.load %arg3[%c0_27, %c0_28] : memref<2x3xf32, #tpu.memory_space<vmem>>, vector<2x3xf32>
    %c0_29 = arith.constant 0 : index
    %c0_30 = arith.constant 0 : index
    %39 = vector.load %arg2[%c0_29, %c0_30] : memref<2x3xf32, #tpu.memory_space<vmem>>, vector<2x3xf32>
    %40 = vector.extract_strided_slice %21 {offsets = [0, 0, 0], sizes = [2, 1, 32], strides = [1, 1, 1]} : vector<2x8x32xf32> to vector<2x1x32xf32>
    %41 = vector.shape_cast %40 : vector<2x1x32xf32> to vector<2x32xf32>
    %42 = tpu.concatenate %38, %39 in 1 : vector<2x3xf32>, vector<2x3xf32> -> vector<2x6xf32>
    %cst_31 = arith.constant dense<0.000000e+00> : vector<2x32xf32>
    %43 = tpu.matmul %42, %1, %cst_31 {dimension_numbers = #tpu.dot_dimension_numbers<[1], [0], [0], [1], [0, 0, 1, 1], [], []>} : vector<2x6xf32>, vector<6x32xf32>, vector<2x32xf32> -> vector<2x32xf32>
    %44 = arith.addf %41, %43 : vector<2x32xf32>
    %45 = arith.addf %44, %7 : vector<2x32xf32>
    %46 = math.tanh %45 : vector<2x32xf32>
    %47 = tpu.concatenate %46, %35 in 1 : vector<2x32xf32>, vector<2x32xf32> -> vector<2x64xf32>
    %cst_32 = arith.constant dense<0.000000e+00> : vector<2x32xf32>
    %48 = tpu.matmul %47, %2, %cst_32 {dimension_numbers = #tpu.dot_dimension_numbers<[1], [0], [0], [1], [0, 0, 1, 1], [], []>} : vector<2x64xf32>, vector<64x32xf32>, vector<2x32xf32> -> vector<2x32xf32>
    %49 = arith.addf %48, %10 : vector<2x32xf32>
    %50 = math.tanh %49 : vector<2x32xf32>
    %cst_33 = arith.constant dense<0.000000e+00> : vector<2x3xf32>
    %51 = tpu.matmul %50, %3, %cst_33 {dimension_numbers = #tpu.dot_dimension_numbers<[1], [0], [0], [1], [0, 0, 1, 1], [], []>} : vector<2x32xf32>, vector<32x3xf32>, vector<2x3xf32> -> vector<2x3xf32>
    %52 = arith.addf %38, %51 : vector<2x3xf32>
    %53 = arith.addf %52, %13 : vector<2x3xf32>
    %54 = vector.extract_strided_slice %27 {offsets = [0, 0, 0], sizes = [2, 1, 32], strides = [1, 1, 1]} : vector<2x8x32xf32> to vector<2x1x32xf32>
    %55 = vector.shape_cast %54 : vector<2x1x32xf32> to vector<2x32xf32>
    %56 = tpu.concatenate %53, %36 in 1 : vector<2x3xf32>, vector<2x32xf32> -> vector<2x35xf32>
    %cst_34 = arith.constant dense<0.000000e+00> : vector<2x32xf32>
    %57 = tpu.matmul %56, %4, %cst_34 {dimension_numbers = #tpu.dot_dimension_numbers<[1], [0], [0], [1], [0, 0, 1, 1], [], []>} : vector<2x35xf32>, vector<35x32xf32>, vector<2x32xf32> -> vector<2x32xf32>
    %58 = arith.addf %55, %57 : vector<2x32xf32>
    %59 = arith.addf %58, %16 : vector<2x32xf32>
    %60 = math.tanh %59 : vector<2x32xf32>
    %c0_i32_35 = arith.constant 0 : i32
    %61 = vector.broadcast %c0_i32_35 : i32 to vector<2x1xi32>
    %62 = arith.cmpi eq, %34, %61 : vector<2x1xi32>
    %63 = vector.shape_cast %62 : vector<2x1xi1> to vector<2x1xi1>
    %64 = vector.broadcast %63 : vector<2x1xi1> to vector<2x32xi1>
    %65 = arith.select %64, %60, %37 : vector<2x32xi1>, vector<2x32xf32>
    %66 = vector.extract_strided_slice %21 {offsets = [0, 1, 0], sizes = [2, 1, 32], strides = [1, 1, 1]} : vector<2x8x32xf32> to vector<2x1x32xf32>
    %67 = vector.shape_cast %66 : vector<2x1x32xf32> to vector<2x32xf32>
    %68 = tpu.concatenate %53, %38 in 1 : vector<2x3xf32>, vector<2x3xf32> -> vector<2x6xf32>
    %cst_36 = arith.constant dense<0.000000e+00> : vector<2x32xf32>
    %69 = tpu.matmul %68, %1, %cst_36 {dimension_numbers = #tpu.dot_dimension_numbers<[1], [0], [0], [1], [0, 0, 1, 1], [], []>} : vector<2x6xf32>, vector<6x32xf32>, vector<2x32xf32> -> vector<2x32xf32>
    %70 = arith.addf %67, %69 : vector<2x32xf32>
    %71 = arith.addf %70, %7 : vector<2x32xf32>
    %72 = math.tanh %71 : vector<2x32xf32>
    %73 = tpu.concatenate %72, %50 in 1 : vector<2x32xf32>, vector<2x32xf32> -> vector<2x64xf32>
    %cst_37 = arith.constant dense<0.000000e+00> : vector<2x32xf32>
    %74 = tpu.matmul %73, %2, %cst_37 {dimension_numbers = #tpu.dot_dimension_numbers<[1], [0], [0], [1], [0, 0, 1, 1], [], []>} : vector<2x64xf32>, vector<64x32xf32>, vector<2x32xf32> -> vector<2x32xf32>
    %75 = arith.addf %74, %10 : vector<2x32xf32>
    %76 = math.tanh %75 : vector<2x32xf32>
    %cst_38 = arith.constant dense<0.000000e+00> : vector<2x3xf32>
    %77 = tpu.matmul %76, %3, %cst_38 {dimension_numbers = #tpu.dot_dimension_numbers<[1], [0], [0], [1], [0, 0, 1, 1], [], []>} : vector<2x32xf32>, vector<32x3xf32>, vector<2x3xf32> -> vector<2x3xf32>
    %78 = arith.addf %53, %77 : vector<2x3xf32>
    %79 = arith.addf %78, %13 : vector<2x3xf32>
    %80 = vector.extract_strided_slice %27 {offsets = [0, 1, 0], sizes = [2, 1, 32], strides = [1, 1, 1]} : vector<2x8x32xf32> to vector<2x1x32xf32>
    %81 = vector.shape_cast %80 : vector<2x1x32xf32> to vector<2x32xf32>
    %82 = tpu.concatenate %79, %60 in 1 : vector<2x3xf32>, vector<2x32xf32> -> vector<2x35xf32>
    %cst_39 = arith.constant dense<0.000000e+00> : vector<2x32xf32>
    %83 = tpu.matmul %82, %4, %cst_39 {dimension_numbers = #tpu.dot_dimension_numbers<[1], [0], [0], [1], [0, 0, 1, 1], [], []>} : vector<2x35xf32>, vector<35x32xf32>, vector<2x32xf32> -> vector<2x32xf32>
    %84 = arith.addf %81, %83 : vector<2x32xf32>
    %85 = arith.addf %84, %16 : vector<2x32xf32>
    %86 = math.tanh %85 : vector<2x32xf32>
    %c1_i32_40 = arith.constant 1 : i32
    %87 = vector.broadcast %c1_i32_40 : i32 to vector<2x1xi32>
    %88 = arith.cmpi eq, %34, %87 : vector<2x1xi32>
    %89 = vector.shape_cast %88 : vector<2x1xi1> to vector<2x1xi1>
    %90 = vector.broadcast %89 : vector<2x1xi1> to vector<2x32xi1>
    %91 = arith.select %90, %86, %65 : vector<2x32xi1>, vector<2x32xf32>
    %92 = vector.extract_strided_slice %21 {offsets = [0, 2, 0], sizes = [2, 1, 32], strides = [1, 1, 1]} : vector<2x8x32xf32> to vector<2x1x32xf32>
    %93 = vector.shape_cast %92 : vector<2x1x32xf32> to vector<2x32xf32>
    %94 = tpu.concatenate %79, %53 in 1 : vector<2x3xf32>, vector<2x3xf32> -> vector<2x6xf32>
    %cst_41 = arith.constant dense<0.000000e+00> : vector<2x32xf32>
    %95 = tpu.matmul %94, %1, %cst_41 {dimension_numbers = #tpu.dot_dimension_numbers<[1], [0], [0], [1], [0, 0, 1, 1], [], []>} : vector<2x6xf32>, vector<6x32xf32>, vector<2x32xf32> -> vector<2x32xf32>
    %96 = arith.addf %93, %95 : vector<2x32xf32>
    %97 = arith.addf %96, %7 : vector<2x32xf32>
    %98 = math.tanh %97 : vector<2x32xf32>
    %99 = tpu.concatenate %98, %76 in 1 : vector<2x32xf32>, vector<2x32xf32> -> vector<2x64xf32>
    %cst_42 = arith.constant dense<0.000000e+00> : vector<2x32xf32>
    %100 = tpu.matmul %99, %2, %cst_42 {dimension_numbers = #tpu.dot_dimension_numbers<[1], [0], [0], [1], [0, 0, 1, 1], [], []>} : vector<2x64xf32>, vector<64x32xf32>, vector<2x32xf32> -> vector<2x32xf32>
    %101 = arith.addf %100, %10 : vector<2x32xf32>
    %102 = math.tanh %101 : vector<2x32xf32>
    %cst_43 = arith.constant dense<0.000000e+00> : vector<2x3xf32>
    %103 = tpu.matmul %102, %3, %cst_43 {dimension_numbers = #tpu.dot_dimension_numbers<[1], [0], [0], [1], [0, 0, 1, 1], [], []>} : vector<2x32xf32>, vector<32x3xf32>, vector<2x3xf32> -> vector<2x3xf32>
    %104 = arith.addf %79, %103 : vector<2x3xf32>
    %105 = arith.addf %104, %13 : vector<2x3xf32>
    %106 = vector.extract_strided_slice %27 {offsets = [0, 2, 0], sizes = [2, 1, 32], strides = [1, 1, 1]} : vector<2x8x32xf32> to vector<2x1x32xf32>
    %107 = vector.shape_cast %106 : vector<2x1x32xf32> to vector<2x32xf32>
    %108 = tpu.concatenate %105, %86 in 1 : vector<2x3xf32>, vector<2x32xf32> -> vector<2x35xf32>
    %cst_44 = arith.constant dense<0.000000e+00> : vector<2x32xf32>
    %109 = tpu.matmul %108, %4, %cst_44 {dimension_numbers = #tpu.dot_dimension_numbers<[1], [0], [0], [1], [0, 0, 1, 1], [], []>} : vector<2x35xf32>, vector<35x32xf32>, vector<2x32xf32> -> vector<2x32xf32>
    %110 = arith.addf %107, %109 : vector<2x32xf32>
    %111 = arith.addf %110, %16 : vector<2x32xf32>
    %112 = math.tanh %111 : vector<2x32xf32>
    %c2_i32 = arith.constant 2 : i32
    %113 = vector.broadcast %c2_i32 : i32 to vector<2x1xi32>
    %114 = arith.cmpi eq, %34, %113 : vector<2x1xi32>
    %115 = vector.shape_cast %114 : vector<2x1xi1> to vector<2x1xi1>
    %116 = vector.broadcast %115 : vector<2x1xi1> to vector<2x32xi1>
    %117 = arith.select %116, %112, %91 : vector<2x32xi1>, vector<2x32xf32>
    %118 = vector.extract_strided_slice %21 {offsets = [0, 3, 0], sizes = [2, 1, 32], strides = [1, 1, 1]} : vector<2x8x32xf32> to vector<2x1x32xf32>
    %119 = vector.shape_cast %118 : vector<2x1x32xf32> to vector<2x32xf32>
    %120 = tpu.concatenate %105, %79 in 1 : vector<2x3xf32>, vector<2x3xf32> -> vector<2x6xf32>
    %cst_45 = arith.constant dense<0.000000e+00> : vector<2x32xf32>
    %121 = tpu.matmul %120, %1, %cst_45 {dimension_numbers = #tpu.dot_dimension_numbers<[1], [0], [0], [1], [0, 0, 1, 1], [], []>} : vector<2x6xf32>, vector<6x32xf32>, vector<2x32xf32> -> vector<2x32xf32>
    %122 = arith.addf %119, %121 : vector<2x32xf32>
    %123 = arith.addf %122, %7 : vector<2x32xf32>
    %124 = math.tanh %123 : vector<2x32xf32>
    %125 = tpu.concatenate %124, %102 in 1 : vector<2x32xf32>, vector<2x32xf32> -> vector<2x64xf32>
    %cst_46 = arith.constant dense<0.000000e+00> : vector<2x32xf32>
    %126 = tpu.matmul %125, %2, %cst_46 {dimension_numbers = #tpu.dot_dimension_numbers<[1], [0], [0], [1], [0, 0, 1, 1], [], []>} : vector<2x64xf32>, vector<64x32xf32>, vector<2x32xf32> -> vector<2x32xf32>
    %127 = arith.addf %126, %10 : vector<2x32xf32>
    %128 = math.tanh %127 : vector<2x32xf32>
    %cst_47 = arith.constant dense<0.000000e+00> : vector<2x3xf32>
    %129 = tpu.matmul %128, %3, %cst_47 {dimension_numbers = #tpu.dot_dimension_numbers<[1], [0], [0], [1], [0, 0, 1, 1], [], []>} : vector<2x32xf32>, vector<32x3xf32>, vector<2x3xf32> -> vector<2x3xf32>
    %130 = arith.addf %105, %129 : vector<2x3xf32>
    %131 = arith.addf %130, %13 : vector<2x3xf32>
    %132 = vector.extract_strided_slice %27 {offsets = [0, 3, 0], sizes = [2, 1, 32], strides = [1, 1, 1]} : vector<2x8x32xf32> to vector<2x1x32xf32>
    %133 = vector.shape_cast %132 : vector<2x1x32xf32> to vector<2x32xf32>
    %134 = tpu.concatenate %131, %112 in 1 : vector<2x3xf32>, vector<2x32xf32> -> vector<2x35xf32>
    %cst_48 = arith.constant dense<0.000000e+00> : vector<2x32xf32>
    %135 = tpu.matmul %134, %4, %cst_48 {dimension_numbers = #tpu.dot_dimension_numbers<[1], [0], [0], [1], [0, 0, 1, 1], [], []>} : vector<2x35xf32>, vector<35x32xf32>, vector<2x32xf32> -> vector<2x32xf32>
    %136 = arith.addf %133, %135 : vector<2x32xf32>
    %137 = arith.addf %136, %16 : vector<2x32xf32>
    %138 = math.tanh %137 : vector<2x32xf32>
    %c3_i32 = arith.constant 3 : i32
    %139 = vector.broadcast %c3_i32 : i32 to vector<2x1xi32>
    %140 = arith.cmpi eq, %34, %139 : vector<2x1xi32>
    %141 = vector.shape_cast %140 : vector<2x1xi1> to vector<2x1xi1>
    %142 = vector.broadcast %141 : vector<2x1xi1> to vector<2x32xi1>
    %143 = arith.select %142, %138, %117 : vector<2x32xi1>, vector<2x32xf32>
    %144 = vector.extract_strided_slice %21 {offsets = [0, 4, 0], sizes = [2, 1, 32], strides = [1, 1, 1]} : vector<2x8x32xf32> to vector<2x1x32xf32>
    %145 = vector.shape_cast %144 : vector<2x1x32xf32> to vector<2x32xf32>
    %146 = tpu.concatenate %131, %105 in 1 : vector<2x3xf32>, vector<2x3xf32> -> vector<2x6xf32>
    %cst_49 = arith.constant dense<0.000000e+00> : vector<2x32xf32>
    %147 = tpu.matmul %146, %1, %cst_49 {dimension_numbers = #tpu.dot_dimension_numbers<[1], [0], [0], [1], [0, 0, 1, 1], [], []>} : vector<2x6xf32>, vector<6x32xf32>, vector<2x32xf32> -> vector<2x32xf32>
    %148 = arith.addf %145, %147 : vector<2x32xf32>
    %149 = arith.addf %148, %7 : vector<2x32xf32>
    %150 = math.tanh %149 : vector<2x32xf32>
    %151 = tpu.concatenate %150, %128 in 1 : vector<2x32xf32>, vector<2x32xf32> -> vector<2x64xf32>
    %cst_50 = arith.constant dense<0.000000e+00> : vector<2x32xf32>
    %152 = tpu.matmul %151, %2, %cst_50 {dimension_numbers = #tpu.dot_dimension_numbers<[1], [0], [0], [1], [0, 0, 1, 1], [], []>} : vector<2x64xf32>, vector<64x32xf32>, vector<2x32xf32> -> vector<2x32xf32>
    %153 = arith.addf %152, %10 : vector<2x32xf32>
    %154 = math.tanh %153 : vector<2x32xf32>
    %cst_51 = arith.constant dense<0.000000e+00> : vector<2x3xf32>
    %155 = tpu.matmul %154, %3, %cst_51 {dimension_numbers = #tpu.dot_dimension_numbers<[1], [0], [0], [1], [0, 0, 1, 1], [], []>} : vector<2x32xf32>, vector<32x3xf32>, vector<2x3xf32> -> vector<2x3xf32>
    %156 = arith.addf %131, %155 : vector<2x3xf32>
    %157 = arith.addf %156, %13 : vector<2x3xf32>
    %158 = vector.extract_strided_slice %27 {offsets = [0, 4, 0], sizes = [2, 1, 32], strides = [1, 1, 1]} : vector<2x8x32xf32> to vector<2x1x32xf32>
    %159 = vector.shape_cast %158 : vector<2x1x32xf32> to vector<2x32xf32>
    %160 = tpu.concatenate %157, %138 in 1 : vector<2x3xf32>, vector<2x32xf32> -> vector<2x35xf32>
    %cst_52 = arith.constant dense<0.000000e+00> : vector<2x32xf32>
    %161 = tpu.matmul %160, %4, %cst_52 {dimension_numbers = #tpu.dot_dimension_numbers<[1], [0], [0], [1], [0, 0, 1, 1], [], []>} : vector<2x35xf32>, vector<35x32xf32>, vector<2x32xf32> -> vector<2x32xf32>
    %162 = arith.addf %159, %161 : vector<2x32xf32>
    %163 = arith.addf %162, %16 : vector<2x32xf32>
    %164 = math.tanh %163 : vector<2x32xf32>
    %c4_i32 = arith.constant 4 : i32
    %165 = vector.broadcast %c4_i32 : i32 to vector<2x1xi32>
    %166 = arith.cmpi eq, %34, %165 : vector<2x1xi32>
    %167 = vector.shape_cast %166 : vector<2x1xi1> to vector<2x1xi1>
    %168 = vector.broadcast %167 : vector<2x1xi1> to vector<2x32xi1>
    %169 = arith.select %168, %164, %143 : vector<2x32xi1>, vector<2x32xf32>
    %170 = vector.extract_strided_slice %21 {offsets = [0, 5, 0], sizes = [2, 1, 32], strides = [1, 1, 1]} : vector<2x8x32xf32> to vector<2x1x32xf32>
    %171 = vector.shape_cast %170 : vector<2x1x32xf32> to vector<2x32xf32>
    %172 = tpu.concatenate %157, %131 in 1 : vector<2x3xf32>, vector<2x3xf32> -> vector<2x6xf32>
    %cst_53 = arith.constant dense<0.000000e+00> : vector<2x32xf32>
    %173 = tpu.matmul %172, %1, %cst_53 {dimension_numbers = #tpu.dot_dimension_numbers<[1], [0], [0], [1], [0, 0, 1, 1], [], []>} : vector<2x6xf32>, vector<6x32xf32>, vector<2x32xf32> -> vector<2x32xf32>
    %174 = arith.addf %171, %173 : vector<2x32xf32>
    %175 = arith.addf %174, %7 : vector<2x32xf32>
    %176 = math.tanh %175 : vector<2x32xf32>
    %177 = tpu.concatenate %176, %154 in 1 : vector<2x32xf32>, vector<2x32xf32> -> vector<2x64xf32>
    %cst_54 = arith.constant dense<0.000000e+00> : vector<2x32xf32>
    %178 = tpu.matmul %177, %2, %cst_54 {dimension_numbers = #tpu.dot_dimension_numbers<[1], [0], [0], [1], [0, 0, 1, 1], [], []>} : vector<2x64xf32>, vector<64x32xf32>, vector<2x32xf32> -> vector<2x32xf32>
    %179 = arith.addf %178, %10 : vector<2x32xf32>
    %180 = math.tanh %179 : vector<2x32xf32>
    %cst_55 = arith.constant dense<0.000000e+00> : vector<2x3xf32>
    %181 = tpu.matmul %180, %3, %cst_55 {dimension_numbers = #tpu.dot_dimension_numbers<[1], [0], [0], [1], [0, 0, 1, 1], [], []>} : vector<2x32xf32>, vector<32x3xf32>, vector<2x3xf32> -> vector<2x3xf32>
    %182 = arith.addf %157, %181 : vector<2x3xf32>
    %183 = arith.addf %182, %13 : vector<2x3xf32>
    %184 = vector.extract_strided_slice %27 {offsets = [0, 5, 0], sizes = [2, 1, 32], strides = [1, 1, 1]} : vector<2x8x32xf32> to vector<2x1x32xf32>
    %185 = vector.shape_cast %184 : vector<2x1x32xf32> to vector<2x32xf32>
    %186 = tpu.concatenate %183, %164 in 1 : vector<2x3xf32>, vector<2x32xf32> -> vector<2x35xf32>
    %cst_56 = arith.constant dense<0.000000e+00> : vector<2x32xf32>
    %187 = tpu.matmul %186, %4, %cst_56 {dimension_numbers = #tpu.dot_dimension_numbers<[1], [0], [0], [1], [0, 0, 1, 1], [], []>} : vector<2x35xf32>, vector<35x32xf32>, vector<2x32xf32> -> vector<2x32xf32>
    %188 = arith.addf %185, %187 : vector<2x32xf32>
    %189 = arith.addf %188, %16 : vector<2x32xf32>
    %190 = math.tanh %189 : vector<2x32xf32>
    %c5_i32 = arith.constant 5 : i32
    %191 = vector.broadcast %c5_i32 : i32 to vector<2x1xi32>
    %192 = arith.cmpi eq, %34, %191 : vector<2x1xi32>
    %193 = vector.shape_cast %192 : vector<2x1xi1> to vector<2x1xi1>
    %194 = vector.broadcast %193 : vector<2x1xi1> to vector<2x32xi1>
    %195 = arith.select %194, %190, %169 : vector<2x32xi1>, vector<2x32xf32>
    %196 = vector.extract_strided_slice %21 {offsets = [0, 6, 0], sizes = [2, 1, 32], strides = [1, 1, 1]} : vector<2x8x32xf32> to vector<2x1x32xf32>
    %197 = vector.shape_cast %196 : vector<2x1x32xf32> to vector<2x32xf32>
    %198 = tpu.concatenate %183, %157 in 1 : vector<2x3xf32>, vector<2x3xf32> -> vector<2x6xf32>
    %cst_57 = arith.constant dense<0.000000e+00> : vector<2x32xf32>
    %199 = tpu.matmul %198, %1, %cst_57 {dimension_numbers = #tpu.dot_dimension_numbers<[1], [0], [0], [1], [0, 0, 1, 1], [], []>} : vector<2x6xf32>, vector<6x32xf32>, vector<2x32xf32> -> vector<2x32xf32>
    %200 = arith.addf %197, %199 : vector<2x32xf32>
    %201 = arith.addf %200, %7 : vector<2x32xf32>
    %202 = math.tanh %201 : vector<2x32xf32>
    %203 = tpu.concatenate %202, %180 in 1 : vector<2x32xf32>, vector<2x32xf32> -> vector<2x64xf32>
    %cst_58 = arith.constant dense<0.000000e+00> : vector<2x32xf32>
    %204 = tpu.matmul %203, %2, %cst_58 {dimension_numbers = #tpu.dot_dimension_numbers<[1], [0], [0], [1], [0, 0, 1, 1], [], []>} : vector<2x64xf32>, vector<64x32xf32>, vector<2x32xf32> -> vector<2x32xf32>
    %205 = arith.addf %204, %10 : vector<2x32xf32>
    %206 = math.tanh %205 : vector<2x32xf32>
    %cst_59 = arith.constant dense<0.000000e+00> : vector<2x3xf32>
    %207 = tpu.matmul %206, %3, %cst_59 {dimension_numbers = #tpu.dot_dimension_numbers<[1], [0], [0], [1], [0, 0, 1, 1], [], []>} : vector<2x32xf32>, vector<32x3xf32>, vector<2x3xf32> -> vector<2x3xf32>
    %208 = arith.addf %183, %207 : vector<2x3xf32>
    %209 = arith.addf %208, %13 : vector<2x3xf32>
    %210 = vector.extract_strided_slice %27 {offsets = [0, 6, 0], sizes = [2, 1, 32], strides = [1, 1, 1]} : vector<2x8x32xf32> to vector<2x1x32xf32>
    %211 = vector.shape_cast %210 : vector<2x1x32xf32> to vector<2x32xf32>
    %212 = tpu.concatenate %209, %190 in 1 : vector<2x3xf32>, vector<2x32xf32> -> vector<2x35xf32>
    %cst_60 = arith.constant dense<0.000000e+00> : vector<2x32xf32>
    %213 = tpu.matmul %212, %4, %cst_60 {dimension_numbers = #tpu.dot_dimension_numbers<[1], [0], [0], [1], [0, 0, 1, 1], [], []>} : vector<2x35xf32>, vector<35x32xf32>, vector<2x32xf32> -> vector<2x32xf32>
    %214 = arith.addf %211, %213 : vector<2x32xf32>
    %215 = arith.addf %214, %16 : vector<2x32xf32>
    %216 = math.tanh %215 : vector<2x32xf32>
    %c6_i32 = arith.constant 6 : i32
    %217 = vector.broadcast %c6_i32 : i32 to vector<2x1xi32>
    %218 = arith.cmpi eq, %34, %217 : vector<2x1xi32>
    %219 = vector.shape_cast %218 : vector<2x1xi1> to vector<2x1xi1>
    %220 = vector.broadcast %219 : vector<2x1xi1> to vector<2x32xi1>
    %221 = arith.select %220, %216, %195 : vector<2x32xi1>, vector<2x32xf32>
    %222 = vector.extract_strided_slice %21 {offsets = [0, 7, 0], sizes = [2, 1, 32], strides = [1, 1, 1]} : vector<2x8x32xf32> to vector<2x1x32xf32>
    %223 = vector.shape_cast %222 : vector<2x1x32xf32> to vector<2x32xf32>
    %224 = tpu.concatenate %209, %183 in 1 : vector<2x3xf32>, vector<2x3xf32> -> vector<2x6xf32>
    %cst_61 = arith.constant dense<0.000000e+00> : vector<2x32xf32>
    %225 = tpu.matmul %224, %1, %cst_61 {dimension_numbers = #tpu.dot_dimension_numbers<[1], [0], [0], [1], [0, 0, 1, 1], [], []>} : vector<2x6xf32>, vector<6x32xf32>, vector<2x32xf32> -> vector<2x32xf32>
    %226 = arith.addf %223, %225 : vector<2x32xf32>
    %227 = arith.addf %226, %7 : vector<2x32xf32>
    %228 = math.tanh %227 : vector<2x32xf32>
    %229 = tpu.concatenate %228, %206 in 1 : vector<2x32xf32>, vector<2x32xf32> -> vector<2x64xf32>
    %cst_62 = arith.constant dense<0.000000e+00> : vector<2x32xf32>
    %230 = tpu.matmul %229, %2, %cst_62 {dimension_numbers = #tpu.dot_dimension_numbers<[1], [0], [0], [1], [0, 0, 1, 1], [], []>} : vector<2x64xf32>, vector<64x32xf32>, vector<2x32xf32> -> vector<2x32xf32>
    %231 = arith.addf %230, %10 : vector<2x32xf32>
    %232 = math.tanh %231 : vector<2x32xf32>
    %cst_63 = arith.constant dense<0.000000e+00> : vector<2x3xf32>
    %233 = tpu.matmul %232, %3, %cst_63 {dimension_numbers = #tpu.dot_dimension_numbers<[1], [0], [0], [1], [0, 0, 1, 1], [], []>} : vector<2x32xf32>, vector<32x3xf32>, vector<2x3xf32> -> vector<2x3xf32>
    %234 = arith.addf %209, %233 : vector<2x3xf32>
    %235 = arith.addf %234, %13 : vector<2x3xf32>
    %236 = vector.extract_strided_slice %27 {offsets = [0, 7, 0], sizes = [2, 1, 32], strides = [1, 1, 1]} : vector<2x8x32xf32> to vector<2x1x32xf32>
    %237 = vector.shape_cast %236 : vector<2x1x32xf32> to vector<2x32xf32>
    %238 = tpu.concatenate %235, %216 in 1 : vector<2x3xf32>, vector<2x32xf32> -> vector<2x35xf32>
    %cst_64 = arith.constant dense<0.000000e+00> : vector<2x32xf32>
    %239 = tpu.matmul %238, %4, %cst_64 {dimension_numbers = #tpu.dot_dimension_numbers<[1], [0], [0], [1], [0, 0, 1, 1], [], []>} : vector<2x35xf32>, vector<35x32xf32>, vector<2x32xf32> -> vector<2x32xf32>
    %240 = arith.addf %237, %239 : vector<2x32xf32>
    %241 = arith.addf %240, %16 : vector<2x32xf32>
    %242 = math.tanh %241 : vector<2x32xf32>
    %c7_i32_65 = arith.constant 7 : i32
    %243 = vector.broadcast %c7_i32_65 : i32 to vector<2x1xi32>
    %244 = arith.cmpi eq, %34, %243 : vector<2x1xi32>
    %245 = vector.shape_cast %244 : vector<2x1xi1> to vector<2x1xi1>
    %246 = vector.broadcast %245 : vector<2x1xi1> to vector<2x32xi1>
    %247 = arith.select %246, %242, %221 : vector<2x32xi1>, vector<2x32xf32>
    %248 = vector.shape_cast %53 : vector<2x3xf32> to vector<2x1x3xf32>
    %249 = vector.shape_cast %79 : vector<2x3xf32> to vector<2x1x3xf32>
    %250 = vector.shape_cast %105 : vector<2x3xf32> to vector<2x1x3xf32>
    %251 = vector.shape_cast %131 : vector<2x3xf32> to vector<2x1x3xf32>
    %252 = vector.shape_cast %157 : vector<2x3xf32> to vector<2x1x3xf32>
    %253 = vector.shape_cast %183 : vector<2x3xf32> to vector<2x1x3xf32>
    %254 = vector.shape_cast %209 : vector<2x3xf32> to vector<2x1x3xf32>
    %255 = vector.shape_cast %235 : vector<2x3xf32> to vector<2x1x3xf32>
    %256 = tpu.concatenate %248, %249, %250, %251, %252, %253, %254, %255 in 1 : vector<2x1x3xf32>, vector<2x1x3xf32>, vector<2x1x3xf32>, vector<2x1x3xf32>, vector<2x1x3xf32>, vector<2x1x3xf32>, vector<2x1x3xf32>, vector<2x1x3xf32> -> vector<2x8x3xf32>
    %c0_66 = arith.constant 0 : index
    %c0_67 = arith.constant 0 : index
    %c0_68 = arith.constant 0 : index
    %257 = vector.load %arg18[%c0_66, %c0_67, %c0_68] : memref<2x8x3xf32, #tpu.memory_space<vmem>>, vector<2x8x3xf32>
    tpu.vector_store %arg18[%c0_66, %c0_67, %c0_68], %256 {strides = array<i32>} : memref<2x8x3xf32, #tpu.memory_space<vmem>>, vector<2x8x3xf32>,
    %258 = vector.extract_strided_slice %0 {offsets = [0, 0, 1], sizes = [2, 1, 3], strides = [1, 1, 1]} : vector<2x8x4xf32> to vector<2x1x3xf32>
    %259 = vector.shape_cast %258 : vector<2x1x3xf32> to vector<2x3xf32>
    %260 = tpu.concatenate %247, %259 in 1 : vector<2x32xf32>, vector<2x3xf32> -> vector<2x35xf32>
    %c0_69 = arith.constant 0 : index
    %c0_70 = arith.constant 0 : index
    %261 = vector.load %arg14[%c0_69, %c0_70] : memref<35x32xf32, #tpu.memory_space<vmem>>, vector<35x32xf32>
    %cst_71 = arith.constant dense<0.000000e+00> : vector<2x32xf32>
    %262 = tpu.matmul %260, %261, %cst_71 {dimension_numbers = #tpu.dot_dimension_numbers<[1], [0], [0], [1], [0, 0, 1, 1], [], []>} : vector<2x35xf32>, vector<35x32xf32>, vector<2x32xf32> -> vector<2x32xf32>
    %c0_72 = arith.constant 0 : index
    %c0_73 = arith.constant 0 : index
    %263 = vector.load %arg15[%c0_72, %c0_73] : memref<1x32xf32, #tpu.memory_space<vmem>>, vector<1x32xf32>
    %264 = vector.broadcast %263 : vector<1x32xf32> to vector<2x32xf32>
    %265 = arith.addf %262, %264 : vector<2x32xf32>
    %cst_74 = arith.constant 0.000000e+00 : f32
    %266 = vector.broadcast %cst_74 : f32 to vector<2x32xf32>
    %267 = arith.maximumf %265, %266 : vector<2x32xf32>
    %c0_75 = arith.constant 0 : index
    %c0_76 = arith.constant 0 : index
    %268 = vector.load %arg16[%c0_75, %c0_76] : memref<32x6xf32, #tpu.memory_space<vmem>>, vector<32x6xf32>
    %cst_77 = arith.constant dense<0.000000e+00> : vector<2x6xf32>
    %269 = tpu.matmul %267, %268, %cst_77 {dimension_numbers = #tpu.dot_dimension_numbers<[1], [0], [0], [1], [0, 0, 1, 1], [], []>} : vector<2x32xf32>, vector<32x6xf32>, vector<2x6xf32> -> vector<2x6xf32>
    %c0_78 = arith.constant 0 : index
    %c0_79 = arith.constant 0 : index
    %270 = vector.load %arg17[%c0_78, %c0_79] : memref<1x6xf32, #tpu.memory_space<vmem>>, vector<1x6xf32>
    %271 = vector.broadcast %270 : vector<1x6xf32> to vector<2x6xf32>
    %272 = arith.addf %269, %271 : vector<2x6xf32>
    %c0_80 = arith.constant 0 : index
    %c0_81 = arith.constant 0 : index
    %273 = vector.load %arg19[%c0_80, %c0_81] : memref<2x6xf32, #tpu.memory_space<vmem>>, vector<2x6xf32>
    tpu.vector_store %arg19[%c0_80, %c0_81], %272 {strides = array<i32>} : memref<2x6xf32, #tpu.memory_space<vmem>>, vector<2x6xf32>,
    return
  }
}

</mosaic_0001>

<bundles_post_ra>
// kernel: my_network_forward.1
= control target key start
LH: loop header
LB: loop body
LE: loop exit
PB: predicated region body
PF: predicated region fallthrough
CT: control target
= control target key end

     0   :  { %s2480_s0 = inlined_call_operand.vmem [shape: f32[2,8,4], index: 0, kind: input, shape index: {}]   ;;  %s2481_s1 = inlined_call_operand.vmem [shape: s32[2,1], index: 1, kind: input, shape index: {}]   ;;  %s2482_s2 = inlined_call_operand.vmem [shape: f32[2,3], index: 2, kind: input, shape index: {}]   ;;  %s2483_s3 = inlined_call_operand.vmem [shape: f32[2,3], index: 3, kind: input, shape index: {}]   ;;  %s2484_s4 = inlined_call_operand.vmem [shape: f32[4,32], index: 4, kind: input, shape index: {}]   ;;  %s2485_s5 = inlined_call_operand.vmem [shape: f32[6,32], index: 5, kind: input, shape index: {}]   ;;  %s2486_s6 = inlined_call_operand.vmem [shape: f32[1,32], index: 6, kind: input, shape index: {}]   ;;  %s2487_s7 = inlined_call_operand.vmem [shape: f32[64,32], index: 7, kind: input, shape index: {}]   ;;  %s2488_s8 = inlined_call_operand.vmem [shape: f32[1,32], index: 8, kind: input, shape index: {}]   ;;  %s2489_s9 = inlined_call_operand.vmem [shape: f32[32,3], index: 9, kind: input, shape index: {}]   ;;  %s2490_s10 = inlined_call_operand.vmem [shape: f32[1,3], index: 10, kind: input, shape index: {}]   ;;  %s2491_s11 = inlined_call_operand.vmem [shape: f32[1,32], index: 11, kind: input, shape index: {}]   ;;  %s2492_s12 = inlined_call_operand.vmem [shape: f32[35,32], index: 12, kind: input, shape index: {}]   ;;  %s2493_s13 = inlined_call_operand.vmem [shape: f32[1,32], index: 13, kind: input, shape index: {}]   ;;  %s2494_s14 = inlined_call_operand.vmem [shape: f32[35,32], index: 14, kind: input, shape index: {}]   ;;  %s2495_s15 = inlined_call_operand.vmem [shape: f32[1,32], index: 15, kind: input, shape index: {}]   ;;  %s2496_s16 = inlined_call_operand.vmem [shape: f32[32,6], index: 16, kind: input, shape index: {}]   ;;  %s2497_s17 = inlined_call_operand.vmem [shape: f32[1,6], index: 17, kind: input, shape index: {}]   ;;  %s2498_s18 = inlined_call_operand.vmem [shape: f32[2,8,3], index: 18, kind: output, shape index: {0}]   ;;  %s2499_s19 = inlined_call_operand.hbm [shape: f32[2,6], index: 19, kind: output, shape index: {1}]  }
   0x1   :  { %2501 = sst [smem:[#allocation5_spill]] %s2480_s0 }
   0x2   :  { %2502 = sst [smem:[#allocation6_spill]] %s2481_s1 }
   0x3   :  { %2503 = sst [smem:[#allocation7_spill]] %s2482_s2 }
   0x4   :  { %2504 = sst [smem:[#allocation8_spill]] %s2483_s3 }
   0x5   :  { %s2505_s20 = sld [smem:[#allocation7_spill]]  ;;  %s1718_s21 = smov 3  }
   0xb   :  { %v171_v0 = vld [vmem:[%s2505_s20] sm:$0x3] }
   0xc   :  { %173 = vrot.lane.b32.xlu0 %v171_v0, %s1718_s21 }
   0xd   :  { %25 = vsyncpa [#allocation3], 0  ;;  %v1830_v1 = vld [vmem:[%s2485_s5] sm:$0x3f]  ;;  %vm182_vm0 = vcmask 1045504   ;;  %s2506_s24 = sld [smem:[#allocation8_spill]] }
   0xe   :  { %1541 = vmatpush.msk.msra.mxu2 %vm182_vm0, %v1830_v1  ;;  %v98_v3 = vld [vmem:[%s2484_s4] sm:$0xf]  ;;  %vm103_vm1 = vcmask 1043456   ;;  %s2507_s27 = sld [smem:[#allocation5_spill]]  ;;  %vm99_vm2 = vcmask 31744   ;;  %vm176_vm3 = vcmask 23552  }
   0xf   :  { %1536 = vmatpush.msk.msra.mxu0 %vm103_vm1, %v98_v3  ;;  %1538 = vmatpush.msk.msra.mxu1 %vm103_vm1, %v98_v3  ;;  %vm178_vm4 = vcmask 48128   ;;  %v1866_v8 = vld [vmem:[%s2487_s7 + $0x38] sm:$0xff]  ;;  %v1872_v9 = vld [vmem:[%s2487_s7 + $0x30] sm:$0xff]  ;;  %v1878_v10 = vld [vmem:[%s2487_s7 + $0x28] sm:$0xff]  ;;  %vm219_vm5 = vcmask 1041409   ;;  %vm222_vm6 = vcmask 261120  }
  0x10   :  { %1547 = vmatpush.msk.msrb.mxu2 %vm182_vm0, %v1830_v1  ;;  %236 = vmatpush.msra.mxu3 %v1866_v8  ;;  %v1883_v11 = vld [vmem:[%s2487_s7 + $0x20] sm:$0xff]  ;;  %v1889_v12 = vld [vmem:[%s2487_s7 + $0x18] sm:$0xff]  ;;  %v1895_v13 = vld [vmem:[%s2487_s7 + $0x10] sm:$0xff]  ;;  %vm224_vm7 = vcmask 523264   ;;  %s1719_s26 = smov 32   ;;  %vm279_vm8 = vcmask 1042432  }
  0x11   :  { %v1901_v14 = vld [vmem:[%s2487_s7 + $0x8] sm:$0xff]  ;;  %v1907_v15 = vld [vmem:[%s2487_s7] sm:$0xff]  ;;  %v1932_v30 = vld [vmem:[%s2489_s9 + $0x18] sm:$0xff]  ;;  %v1720_v44 = vmov 0   ;;  %vm275_vm9 = vcmask 285696   ;;  %vm366_vm10 = vcmask 1042434  }
  0x12   :  { %237 = vmatpush.msra.mxu3 %v1872_v9  ;;  %v1920_v19 = vld [vmem:[%s2486_s6] ss:$0 sm:$0xff]  ;;  %264 = vmatpush.msrb.mxu0 %v1932_v30  ;;  %v1938_v31 = vld [vmem:[%s2489_s9 + $0x10] sm:$0xff]  ;;  %v1944_v32 = vld [vmem:[%s2489_s9 + $0x8] sm:$0xff]  ;;  %vm515_vm11 = vcmask 1043459   ;;  %vm666_vm12 = vcmask 1044484  }
  0x13   :  { %v1835_v2 = vld [vmem:[%s2506_s24] sm:$0x3]  ;;  %v1983_v40 = vld [vmem:[%s2492_s12 + $0x18] sm:$0xff]  ;;  %v1994_v41 = vld [vmem:[%s2492_s12 + $0x10] sm:$0xff]  ;;  %1598 = vset.pattern.permute.xlu0 %v1720_v44  ;;  %1597 = vset.pattern.permute.xlu2 %v1720_v44  ;;  %vm817_vm13 = vcmask 1045509   ;;  %vm968_vm14 = vcmask 1046534  }
  0x14   :  { %326 = vrot.lane.b32.xlu0 %v1835_v2, %s1718_s21  ;;  %v1847_v4 = vld [vmem:[%s2507_s27] sm:$0xff]  ;;  %v1852_v5 = vld [vmem:[%s2507_s27 + $0x8] sm:$0xff]  ;;  %238 = vmatpush.msra.mxu3 %v1878_v10  ;;  %s2508_s3 = sld [smem:[#allocation6_spill]]  ;;  %vm1119_vm15 = vcmask 1047559   ;;  %s1721_s30 = smov 31  }
  0x15   :  { %1537 = vmatmul.msk.f32.vlgmr.msra.gmra.mxu0 %vm99_vm2, %v1847_v4  ;;  %1539 = vmatmul.msk.f32.vlgmr.msra.gmra.mxu1 %vm99_vm2, %v1852_v5  ;;  %v1951_v33 = vld [vmem:[%s2489_s9] sm:$0xff]  ;;  %v2001_v42 = vld [vmem:[%s2492_s12 + $0x8] sm:$0xff] }
  0x16   :  { %239 = vmatpush.msra.mxu3 %v1883_v11  ;;  %265 = vmatpush.msrb.mxu0 %v1938_v31  ;;  %v1968_v34 = vld [vmem:[%s2488_s8] ss:$0 sm:$0xff] }
  0x17   :  { %v1978_v39 = vld [vmem:[%s2492_s12 + $0x20] sm:$0x7]  ;;  %1599 = vset.pattern.permute.xlu1 %v1720_v44 }
  0x18   :  { %240 = vmatpush.msra.mxu3 %v1889_v12  ;;  %266 = vmatpush.msrb.mxu0 %v1944_v32  ;;  %v2008_v43 = vld [vmem:[%s2492_s12] sm:$0xff] }
  0x19   :  { %1545 = vmatpush.msk.msrb.mxu1 %vm279_vm8, %v1978_v39  ;;  %v2025_v45 = vld [vmem:[%s2490_s10] ss:$0 sm:$0xff] }
  0x1a   :  { %241 = vmatpush.msra.mxu3 %v1895_v13  ;;  %267 = vmatpush.msrb.mxu0 %v1951_v33 }
  0x1b   :  { %295 = vmatpush.msrb.mxu1 %v1983_v40 }
  0x1c   :  { %242 = vmatpush.msra.mxu3 %v1901_v14  ;;  %386 = vmatpush.msra.mxu0 %v1866_v8 }
  0x1d   :  { %296 = vmatpush.msrb.mxu1 %v1994_v41  ;;  %152 = vperm.xlu0 %1598, %v1847_v4  }
  0x1e   :  { %243 = vmatpush.msra.mxu3 %v1907_v15  ;;  %387 = vmatpush.msra.mxu0 %v1872_v9 }
  0x1f   :  { %297 = vmatpush.msrb.mxu1 %v2001_v42 }
  0x20   :  { %1553 = vmatpush.msk.msrb.mxu3 %vm182_vm0, %v1830_v1  ;;  %388 = vmatpush.msra.mxu0 %v1878_v10 }
  0x21   :  { %298 = vmatpush.msrb.mxu1 %v2008_v43 }
  0x22   :  { %389 = vmatpush.msra.mxu0 %v1883_v11 }
  0x23   :  { %1551 = vmatpush.msk.msra.mxu1 %vm279_vm8, %v1978_v39 }
  0x24   :  { %390 = vmatpush.msra.mxu0 %v1889_v12 }
  0x25   :  { %443 = vmatpush.msra.mxu1 %v1983_v40 }
  0x26   :  { %391 = vmatpush.msra.mxu0 %v1895_v13 }
  0x27   :  { %444 = vmatpush.msra.mxu1 %v1994_v41 }
  0x28   :  { %392 = vmatpush.msra.mxu0 %v1901_v14 }
  0x29   :  { %445 = vmatpush.msra.mxu1 %v2001_v42 }
  0x2a   :  { %393 = vmatpush.msra.mxu0 %v1907_v15 }
  0x2b   :  { %446 = vmatpush.msra.mxu1 %v2008_v43 }
  0x7e   :  { %v174_v6 = vpop.permute.xlu0 %173 }
  0x7f   :  { %v177_v7 = vsel %vm176_vm3, %v1835_v2, %v174_v6 }
  0x80   :  { %1542 = vmatmul.msk.f32.vlgmr.msra.gmra.mxu2 %vm178_vm4, %v177_v7 }
  0x81   :  { %414 = vmatpush.msra.mxu2 %v1932_v30 }
  0x83   :  { %415 = vmatpush.msra.mxu2 %v1938_v31 }
  0x85   :  { %416 = vmatpush.msra.mxu2 %v1944_v32 }
  0x86   :  { %v327_v48 = vpop.permute.xlu0 %326 }
  0x87   :  { %417 = vmatpush.msra.mxu2 %v1951_v33 }
  0x92   :  { %v1913_v16 = vpop.f32.mrf.mxu0  ;;  %v1915_v18 = vpop.f32.mrf.mxu1 }
 0x103   :  { %v203_v17 = vpop.f32.mrf.mxu2 }
 0x104   :  { %v207_v20 = vrot.slane %v203_v17, 1  ;;  %v210_v21 = vadd.f32 %v203_v17, %v1913_v16  ;;  %v1603_v17 = vld [vmem:[%s2491_s11] ss:$0 sm:$0xff] }
 0x106   :  { %v211_v22 = vadd.f32 %v207_v20, %v1915_v18  ;;  %v212_v23 = vadd.f32 %v1920_v19, %v210_v21  ;;  %v153_v20 = vpop.permute.xlu0 %152 }
 0x107   :  { %v2074_v21 = vmul.f32 %v1603_v17, %v153_v20 }
 0x108   :  { %v213_v24 = vadd.f32 %v1920_v19, %v211_v22 }
 0x10a   :  { %1607 = vtanh.f32 %v213_v24  ;;  %v2079_v24 = vld [vmem:[%s2493_s13] ss:$0 sm:$0xff] }
 0x10b   :  { %1609 = vtanh.f32 %v212_v23 }
 0x110   :  { %v1608_v25 = vpop.eup %1607 }
 0x111   :  { %v218_v26 = vrot.slane %v1608_v25, 7  ;;  %v1610_v27 = vpop.eup %1609 }
 0x113   :  { %v220_v28 = vsel %vm219_vm5, %v218_v26, %v1610_v27 }
 0x114   :  { %v223_v29 = vsel %vm222_vm6, %v220_v28, 0.0 }
 0x115   :  { %1543 = vmatmul.msk.f32.vlgmr.msra.gmra.mxu3 %vm224_vm7, %v223_v29 }
 0x116   :  { %1557 = vmatpush.msk.msra.mxu3 %vm279_vm8, %v1978_v39 }
 0x118   :  { %592 = vmatpush.msra.mxu3 %v1983_v40 }
 0x11a   :  { %593 = vmatpush.msra.mxu3 %v1994_v41 }
 0x11c   :  { %594 = vmatpush.msra.mxu3 %v2001_v42 }
 0x11e   :  { %595 = vmatpush.msra.mxu3 %v2008_v43 }
 0x198   :  { %v245_v35 = vpop.f32.mrf.mxu3 }
 0x199   :  { %v246_v36 = vadd.f32 %v1968_v34, %v245_v35 }
 0x19b   :  { %1611 = vtanh.f32 %v246_v36 }
 0x1a1   :  { %v1612_v37 = vpop.eup %1611 }
 0x1a2   :  { %1544 = vmatmul.msk.f32.vlgmr.msrb.gmra.mxu0 %vm222_vm6, %v1612_v37  ;;  %v369_v38 = vrot.slane %v1612_v37, 7 }
 0x1a3   :  { %1559 = vmatpush.msk.msrb.mxu0 %vm182_vm0, %v1830_v1 }
 0x1a4   :  { %370 = vrot.lane.b32.xlu1 %v369_v38, %s1719_s26 }
 0x216   :  { %v371_v61 = vpop.permute.xlu1 %370 }
 0x21f   :  { %v269_v46 = vpop.f32.mrf.mxu0 }
 0x220   :  { %v272_v47 = vadd.f32 %v269_v46, %v1835_v2 }
 0x222   :  { %v2029_v49 = vadd.f32 %v2025_v45, %v272_v47 }
 0x224   :  { %v329_v50 = vsel %vm176_vm3, %v2029_v49, %v327_v48  ;;  %474 = vrot.lane.b32.xlu1 %v2029_v49, %s1718_s21  ;;  %v274_v51 = vsel %vm176_vm3, %v2029_v49, 0.0 }
 0x225   :  { %1546 = vmatmul.msk.f32.vlgmr.msrb.gmra.mxu1 %vm275_vm9, %v274_v51  ;;  %1548 = vmatmul.msk.f32.vlgmr.msrb.gmra.mxu2 %vm178_vm4, %v329_v50 }
 0x226   :  { %535 = vmatpush.msrb.mxu2 %v1866_v8  ;;  %563 = vmatpush.msrb.mxu1 %v1932_v30 }
 0x228   :  { %536 = vmatpush.msrb.mxu2 %v1872_v9  ;;  %564 = vmatpush.msrb.mxu1 %v1938_v31 }
 0x22a   :  { %537 = vmatpush.msrb.mxu2 %v1878_v10  ;;  %565 = vmatpush.msrb.mxu1 %v1944_v32 }
 0x22c   :  { %538 = vmatpush.msrb.mxu2 %v1883_v11  ;;  %566 = vmatpush.msrb.mxu1 %v1951_v33 }
 0x22e   :  { %539 = vmatpush.msrb.mxu2 %v1889_v12 }
 0x230   :  { %540 = vmatpush.msrb.mxu2 %v1895_v13 }
 0x232   :  { %541 = vmatpush.msrb.mxu2 %v1901_v14 }
 0x234   :  { %542 = vmatpush.msrb.mxu2 %v1907_v15 }
 0x296   :  { %v475_v50 = vpop.permute.xlu1 %474 }
 0x2a2   :  { %v300_v22 = vpop.f32.mrf.mxu1 }
 0x2a3   :  { %v304_v25 = vrot.slane %v300_v22, 1  ;;  %v307_v26 = vadd.f32 %v300_v22, %v2074_v21 }
 0x2a5   :  { %v309_v28 = vadd.f32 %v2079_v24, %v307_v26 }
 0x2a8   :  { %v350_v52 = vpop.f32.mrf.mxu2 }
 0x2a9   :  { %v354_v53 = vrot.slane %v350_v52, 7  ;;  %v358_v54 = vadd.f32 %v350_v52, %v1915_v18 }
 0x2ab   :  { %v357_v55 = vadd.f32 %v354_v53, %v1913_v16  ;;  %v360_v56 = vadd.f32 %v1920_v19, %v358_v54 }
 0x2ad   :  { %v359_v57 = vadd.f32 %v1920_v19, %v357_v55  ;;  %1613 = vtanh.f32 %v360_v56 }
 0x2af   :  { %1615 = vtanh.f32 %v359_v57 }
 0x2b3   :  { %v1614_v58 = vpop.eup %1613 }
 0x2b4   :  { %v365_v59 = vrot.slane %v1614_v58, 7 }
 0x2b5   :  { %v1616_v60 = vpop.eup %1615 }
 0x2b6   :  { %v367_v62 = vsel %vm366_vm10, %v365_v59, %v1616_v60 }
 0x2b7   :  { %v373_v63 = vsel %vm222_vm6, %v367_v62, %v371_v61 }
 0x2b8   :  { %v375_v0 = vrot.slane %v373_v63, 1 }
 0x2ba   :  { %1549 = vmatmul.msk.f32.vlgmr.msra.gmra.mxu0 %vm224_vm7, %v375_v0 }
 0x2bb   :  { %714 = vmatpush.msra.mxu0 %v1932_v30 }
 0x2bd   :  { %715 = vmatpush.msra.mxu0 %v1938_v31 }
 0x2bf   :  { %716 = vmatpush.msra.mxu0 %v1944_v32 }
 0x2c1   :  { %717 = vmatpush.msra.mxu0 %v1951_v33 }
 0x337   :  { %v395_v2 = vpop.f32.mrf.mxu0 }
 0x338   :  { %v396_v3 = vadd.f32 %v1968_v34, %v395_v2 }
 0x33a   :  { %1617 = vtanh.f32 %v396_v3 }
 0x340   :  { %v1618_v4 = vpop.eup %1617 }
 0x341   :  { %1550 = vmatmul.msk.f32.vlgmr.msra.gmra.mxu2 %vm222_vm6, %v1618_v4  ;;  %v518_v6 = vrot.slane %v1618_v4, 6 }
 0x342   :  { %1563 = vmatpush.msk.msra.mxu2 %vm279_vm8, %v1978_v39 }
 0x343   :  { %519 = vrot.lane.b32.xlu2 %v518_v6, %s1719_s26 }
 0x344   :  { %743 = vmatpush.msra.mxu2 %v1983_v40 }
 0x346   :  { %744 = vmatpush.msra.mxu2 %v1994_v41 }
 0x348   :  { %745 = vmatpush.msra.mxu2 %v2001_v42 }
 0x34a   :  { %746 = vmatpush.msra.mxu2 %v2008_v43 }
 0x34b   :  { %156 = vperm.xlu2 %1597, %v1852_v5  }
 0x39d   :  { %v520_v7 = vpop.permute.xlu2 %519 }
 0x3a5   :  { %v157_v23 = vpop.permute.xlu2 %156 }
 0x3a6   :  { %v2082_v27 = vmul.f32 %v1603_v17, %v157_v23 }
 0x3a8   :  { %v308_v5 = vadd.f32 %v304_v25, %v2082_v27 }
 0x3aa   :  { %v310_v29 = vadd.f32 %v2079_v24, %v308_v5 }
 0x3ac   :  { %1619 = vtanh.f32 %v310_v29 }
 0x3ad   :  { %1621 = vtanh.f32 %v309_v28 }
 0x3b2   :  { %v1620_v35 = vpop.eup %1619 }
 0x3b3   :  { %v321_v36 = vrot.slane %v1620_v35, 7  ;;  %v1622_v37 = vpop.eup %1621 }
 0x3b5   :  { %v2088_v38 = vsel %vm219_vm5, %v321_v36, %v1622_v37 }
 0x3b6   :  { %424 = vrot.lane.b32.xlu1 %v2088_v38, %s1718_s21 }
 0x3c4   :  { %v419_v46 = vpop.f32.mrf.mxu2 }
 0x3c5   :  { %v422_v47 = vadd.f32 %v419_v46, %v2029_v49 }
 0x3c7   :  { %v2094_v48 = vadd.f32 %v2025_v45, %v422_v47 }
 0x3c9   :  { %625 = vrot.lane.b32.xlu2 %v2094_v48, %s1718_s21  ;;  %v477_v51 = vsel %vm176_vm3, %v2094_v48, %v475_v50 }
 0x3ca   :  { %1554 = vmatmul.msk.f32.vlgmr.msrb.gmra.mxu3 %vm178_vm4, %v477_v51 }
 0x3cb   :  { %1565 = vmatpush.msk.msrb.mxu3 %vm182_vm0, %v1830_v1 }
 0x423   :  { %v626_v37 = vpop.permute.xlu2 %625 }
 0x428   :  { %v425_v52 = vpop.permute.xlu1 %424 }
 0x429   :  { %v427_v53 = vsel %vm176_vm3, %v2094_v48, %v425_v52 }
 0x42a   :  { %1552 = vmatmul.msk.f32.vlgmr.msra.gmra.mxu1 %vm275_vm9, %v427_v53 }
 0x42b   :  { %686 = vmatpush.msra.mxu1 %v1866_v8 }
 0x42d   :  { %687 = vmatpush.msra.mxu1 %v1872_v9 }
 0x42f   :  { %688 = vmatpush.msra.mxu1 %v1878_v10 }
 0x431   :  { %689 = vmatpush.msra.mxu1 %v1883_v11 }
 0x433   :  { %690 = vmatpush.msra.mxu1 %v1889_v12 }
 0x435   :  { %691 = vmatpush.msra.mxu1 %v1895_v13 }
 0x437   :  { %692 = vmatpush.msra.mxu1 %v1901_v14 }
 0x439   :  { %693 = vmatpush.msra.mxu1 %v1907_v15 }
 0x44d   :  { %v498_v54 = vpop.f32.mrf.mxu3 }
 0x44e   :  { %v502_v55 = vrot.slane %v498_v54, 6  ;;  %v503_v56 = vrot.slane %v498_v54, 7 }
 0x450   :  { %v506_v57 = vadd.f32 %v502_v55, %v1913_v16  ;;  %v507_v58 = vadd.f32 %v503_v56, %v1915_v18 }
 0x452   :  { %v509_v59 = vadd.f32 %v1920_v19, %v507_v58  ;;  %v508_v60 = vadd.f32 %v1920_v19, %v506_v57 }
 0x454   :  { %1623 = vtanh.f32 %v509_v59 }
 0x455   :  { %1625 = vtanh.f32 %v508_v60 }
 0x45a   :  { %v1624_v61 = vpop.eup %1623 }
 0x45b   :  { %v514_v62 = vrot.slane %v1624_v61, 7  ;;  %v1626_v63 = vpop.eup %1625 }
 0x45d   :  { %v516_v0 = vsel %vm515_vm11, %v514_v62, %v1626_v63 }
 0x45e   :  { %v522_v2 = vsel %vm222_vm6, %v516_v0, %v520_v7 }
 0x45f   :  { %v524_v3 = vrot.slane %v522_v2, 2 }
 0x461   :  { %1555 = vmatmul.msk.f32.vlgmr.msrb.gmra.mxu2 %vm224_vm7, %v524_v3 }
 0x462   :  { %1569 = vmatpush.msk.msrb.mxu2 %vm279_vm8, %v1978_v39 }
 0x464   :  { %894 = vmatpush.msrb.mxu2 %v1983_v40 }
 0x466   :  { %895 = vmatpush.msrb.mxu2 %v1994_v41 }
 0x468   :  { %896 = vmatpush.msrb.mxu2 %v2001_v42 }
 0x46a   :  { %897 = vmatpush.msrb.mxu2 %v2008_v43 }
 0x4a7   :  { %v448_v4 = vpop.f32.mrf.mxu1 }
 0x4a8   :  { %v452_v6 = vrot.slane %v448_v4, 7  ;;  %v456_v17 = vadd.f32 %v448_v4, %v2082_v27 }
 0x4aa   :  { %v455_v7 = vadd.f32 %v452_v6, %v2074_v21  ;;  %v458_v22 = vadd.f32 %v2079_v24, %v456_v17 }
 0x4ac   :  { %v457_v20 = vadd.f32 %v2079_v24, %v455_v7 }
 0x4ae   :  { %1627 = vtanh.f32 %v457_v20 }
 0x4af   :  { %1629 = vtanh.f32 %v458_v22 }
 0x4b4   :  { %v1628_v23 = vpop.eup %1627 }
 0x4b5   :  { %v469_v25 = vrot.slane %v1628_v23, 1  ;;  %v1630_v26 = vpop.eup %1629 }
 0x4b7   :  { %v2131_v5 = vsel %vm219_vm5, %v1630_v26, %v469_v25 }
 0x4b8   :  { %573 = vrot.lane.b32.xlu2 %v2131_v5, %s1718_s21 }
 0x4e4   :  { %v544_v28 = vpop.f32.mrf.mxu2 }
 0x4e5   :  { %v545_v29 = vadd.f32 %v1968_v34, %v544_v28 }
 0x4e7   :  { %1631 = vtanh.f32 %v545_v29 }
 0x4ed   :  { %v1632_v35 = vpop.eup %1631 }
 0x4ee   :  { %1556 = vmatmul.msk.f32.vlgmr.msrb.gmra.mxu1 %vm222_vm6, %v1632_v35  ;;  %v669_v36 = vrot.slane %v1632_v35, 5 }
 0x4ef   :  { %1571 = vmatpush.msk.msrb.mxu1 %vm182_vm0, %v1830_v1 }
 0x4f0   :  { %670 = vrot.lane.b32.xlu1 %v669_v36, %s1719_s26 }
 0x512   :  { %v574_v51 = vpop.permute.xlu2 %573 }
 0x562   :  { %v671_v0 = vpop.permute.xlu1 %670 }
 0x56b   :  { %v568_v46 = vpop.f32.mrf.mxu1 }
 0x56c   :  { %v571_v47 = vadd.f32 %v568_v46, %v2094_v48 }
 0x56e   :  { %v2142_v50 = vadd.f32 %v2025_v45, %v571_v47 }
 0x570   :  { %776 = vrot.lane.b32.xlu0 %v2142_v50, %s1718_s21  ;;  %v576_v52 = vsel %vm176_vm3, %v2142_v50, %v574_v51  ;;  %v628_v53 = vsel %vm176_vm3, %v2142_v50, %v626_v37 }
 0x571   :  { %1558 = vmatmul.msk.f32.vlgmr.msra.gmra.mxu3 %vm275_vm9, %v576_v52  ;;  %1560 = vmatmul.msk.f32.vlgmr.msrb.gmra.mxu0 %vm178_vm4, %v628_v53 }
 0x572   :  { %837 = vmatpush.msrb.mxu0 %v1866_v8  ;;  %865 = vmatpush.msra.mxu3 %v1932_v30 }
 0x574   :  { %838 = vmatpush.msrb.mxu0 %v1872_v9  ;;  %866 = vmatpush.msra.mxu3 %v1938_v31 }
 0x576   :  { %839 = vmatpush.msrb.mxu0 %v1878_v10  ;;  %867 = vmatpush.msra.mxu3 %v1944_v32 }
 0x578   :  { %840 = vmatpush.msrb.mxu0 %v1883_v11  ;;  %868 = vmatpush.msra.mxu3 %v1951_v33 }
 0x57a   :  { %841 = vmatpush.msrb.mxu0 %v1889_v12 }
 0x57c   :  { %842 = vmatpush.msrb.mxu0 %v1895_v13 }
 0x57e   :  { %843 = vmatpush.msrb.mxu0 %v1901_v14 }
 0x580   :  { %844 = vmatpush.msrb.mxu0 %v1907_v15 }
 0x5ee   :  { %v649_v54 = vpop.f32.mrf.mxu0 }
 0x5ef   :  { %v653_v55 = vrot.slane %v649_v54, 5  ;;  %v654_v56 = vrot.slane %v649_v54, 6 }
 0x5f1   :  { %v657_v57 = vadd.f32 %v653_v55, %v1913_v16  ;;  %v658_v58 = vadd.f32 %v654_v56, %v1915_v18  ;;  %v777_v56 = vpop.permute.xlu0 %776 }
 0x5f3   :  { %v660_v59 = vadd.f32 %v1920_v19, %v658_v58  ;;  %v659_v60 = vadd.f32 %v1920_v19, %v657_v57 }
 0x5f4   :  { %v597_v6 = vpop.f32.mrf.mxu3 }
 0x5f5   :  { %1633 = vtanh.f32 %v660_v59  ;;  %v601_v17 = vrot.slane %v597_v6, 6  ;;  %v602_v7 = vrot.slane %v597_v6, 7 }
 0x5f6   :  { %1635 = vtanh.f32 %v659_v60 }
 0x5f7   :  { %v605_v20 = vadd.f32 %v601_v17, %v2074_v21  ;;  %v606_v22 = vadd.f32 %v602_v7, %v2082_v27 }
 0x5f9   :  { %v607_v25 = vadd.f32 %v2079_v24, %v605_v20  ;;  %v608_v28 = vadd.f32 %v2079_v24, %v606_v22 }
 0x5fb   :  { %v1634_v61 = vpop.eup %1633 }
 0x5fc   :  { %v665_v62 = vrot.slane %v1634_v61, 7  ;;  %v1636_v63 = vpop.eup %1635 }
 0x5fe   :  { %v667_v2 = vsel %vm666_vm12, %v665_v62, %v1636_v63 }
 0x5ff   :  { %v673_v3 = vsel %vm222_vm6, %v667_v2, %v671_v0 }
 0x600   :  { %v675_v4 = vrot.slane %v673_v3, 3 }
 0x602   :  { %1561 = vmatmul.msk.f32.vlgmr.msra.gmra.mxu1 %vm224_vm7, %v675_v4 }
 0x603   :  { %1016 = vmatpush.msra.mxu1 %v1932_v30 }
 0x605   :  { %1017 = vmatpush.msra.mxu1 %v1938_v31 }
 0x607   :  { %1018 = vmatpush.msra.mxu1 %v1944_v32 }
 0x609   :  { %1019 = vmatpush.msra.mxu1 %v1951_v33 }
 0x67f   :  { %v695_v23 = vpop.f32.mrf.mxu1 }
 0x680   :  { %v696_v26 = vadd.f32 %v1968_v34, %v695_v23 }
 0x682   :  { %1637 = vtanh.f32 %v696_v26 }
 0x683   :  { %1639 = vtanh.f32 %v607_v25 }
 0x684   :  { %1641 = vtanh.f32 %v608_v28 }
 0x688   :  { %v1638_v29 = vpop.eup %1637 }
 0x689   :  { %1562 = vmatmul.msk.f32.vlgmr.msra.gmra.mxu0 %vm222_vm6, %v1638_v29  ;;  %v820_v35 = vrot.slane %v1638_v29, 4  ;;  %v1640_v36 = vpop.eup %1639 }
 0x68a   :  { %1577 = vmatpush.msk.msra.mxu0 %vm182_vm0, %v1830_v1  ;;  %v1642_v37 = vpop.eup %1641  ;;  %v619_v46 = vrot.slane %v1640_v36, 2 }
 0x68b   :  { %821 = vrot.lane.b32.xlu1 %v820_v35, %s1719_s26  ;;  %v620_v47 = vrot.slane %v1642_v37, 1 }
 0x68d   :  { %v2184_v51 = vsel %vm219_vm5, %v620_v47, %v619_v46 }
 0x693   :  { %724 = vrot.lane.b32.xlu1 %v2184_v51, %s1718_s21 }
 0x6fd   :  { %v822_v52 = vpop.permute.xlu1 %821 }
 0x705   :  { %v725_v57 = vpop.permute.xlu1 %724 }
 0x706   :  { %v719_v53 = vpop.f32.mrf.mxu0 }
 0x707   :  { %v722_v54 = vadd.f32 %v719_v53, %v2142_v50 }
 0x709   :  { %v2190_v55 = vadd.f32 %v2025_v45, %v722_v54 }
 0x70b   :  { %927 = vrot.lane.b32.xlu2 %v2190_v55, %s1718_s21  ;;  %v727_v58 = vsel %vm176_vm3, %v2190_v55, %v725_v57  ;;  %v779_v59 = vsel %vm176_vm3, %v2190_v55, %v777_v56 }
 0x70c   :  { %1564 = vmatmul.msk.f32.vlgmr.msra.gmra.mxu2 %vm275_vm9, %v727_v58  ;;  %1566 = vmatmul.msk.f32.vlgmr.msrb.gmra.mxu3 %vm178_vm4, %v779_v59 }
 0x70d   :  { %988 = vmatpush.msrb.mxu3 %v1866_v8  ;;  %1575 = vmatpush.msk.msra.mxu2 %vm279_vm8, %v1978_v39 }
 0x70f   :  { %989 = vmatpush.msrb.mxu3 %v1872_v9  ;;  %1045 = vmatpush.msra.mxu2 %v1983_v40 }
 0x711   :  { %990 = vmatpush.msrb.mxu3 %v1878_v10  ;;  %1046 = vmatpush.msra.mxu2 %v1994_v41 }
 0x713   :  { %991 = vmatpush.msrb.mxu3 %v1883_v11  ;;  %1047 = vmatpush.msra.mxu2 %v2001_v42 }
 0x715   :  { %992 = vmatpush.msrb.mxu3 %v1889_v12  ;;  %1048 = vmatpush.msra.mxu2 %v2008_v43 }
 0x717   :  { %993 = vmatpush.msrb.mxu3 %v1895_v13 }
 0x719   :  { %994 = vmatpush.msrb.mxu3 %v1901_v14 }
 0x71b   :  { %995 = vmatpush.msrb.mxu3 %v1907_v15 }
 0x78f   :  { %v800_v60 = vpop.f32.mrf.mxu3  ;;  %v748_v23 = vpop.f32.mrf.mxu2 }
 0x790   :  { %v804_v61 = vrot.slane %v800_v60, 4  ;;  %v805_v62 = vrot.slane %v800_v60, 5  ;;  %v752_v25 = vrot.slane %v748_v23, 5  ;;  %v753_v26 = vrot.slane %v748_v23, 6 }
 0x792   :  { %v809_v63 = vadd.f32 %v805_v62, %v1915_v18  ;;  %v808_v0 = vadd.f32 %v804_v61, %v1913_v16  ;;  %v756_v28 = vadd.f32 %v752_v25, %v2074_v21  ;;  %v757_v29 = vadd.f32 %v753_v26, %v2082_v27 }
 0x794   :  { %v811_v2 = vadd.f32 %v1920_v19, %v809_v63  ;;  %v810_v3 = vadd.f32 %v1920_v19, %v808_v0  ;;  %v758_v36 = vadd.f32 %v2079_v24, %v756_v28  ;;  %v759_v46 = vadd.f32 %v2079_v24, %v757_v29  ;;  %v928_v63 = vpop.permute.xlu2 %927 }
 0x796   :  { %1643 = vtanh.f32 %v811_v2 }
 0x797   :  { %1645 = vtanh.f32 %v810_v3 }
 0x79c   :  { %v1644_v4 = vpop.eup %1643 }
 0x79d   :  { %v816_v6 = vrot.slane %v1644_v4, 7  ;;  %v1646_v17 = vpop.eup %1645 }
 0x79f   :  { %v818_v7 = vsel %vm817_vm13, %v816_v6, %v1646_v17 }
 0x7a0   :  { %v824_v20 = vsel %vm222_vm6, %v818_v7, %v822_v52 }
 0x7a1   :  { %v826_v22 = vrot.slane %v824_v20, 4 }
 0x7a3   :  { %1567 = vmatmul.msk.f32.vlgmr.msrb.gmra.mxu0 %vm224_vm7, %v826_v22 }
 0x7a4   :  { %1581 = vmatpush.msk.msrb.mxu0 %vm279_vm8, %v1978_v39 }
 0x7a6   :  { %1196 = vmatpush.msrb.mxu0 %v1983_v40 }
 0x7a8   :  { %1197 = vmatpush.msrb.mxu0 %v1994_v41 }
 0x7aa   :  { %1198 = vmatpush.msrb.mxu0 %v2001_v42 }
 0x7ac   :  { %1199 = vmatpush.msrb.mxu0 %v2008_v43 }
 0x820   :  { %v846_v35 = vpop.f32.mrf.mxu0 }
 0x821   :  { %v847_v37 = vadd.f32 %v1968_v34, %v846_v35 }
 0x823   :  { %1647 = vtanh.f32 %v847_v37 }
 0x824   :  { %1649 = vtanh.f32 %v758_v36 }
 0x825   :  { %1651 = vtanh.f32 %v759_v46 }
 0x829   :  { %v1648_v47 = vpop.eup %1647 }
 0x82a   :  { %1568 = vmatmul.msk.f32.vlgmr.msra.gmra.mxu3 %vm222_vm6, %v1648_v47  ;;  %v971_v52 = vrot.slane %v1648_v47, 3  ;;  %v1650_v53 = vpop.eup %1649 }
 0x82b   :  { %1583 = vmatpush.msk.msra.mxu3 %vm182_vm0, %v1830_v1  ;;  %v1652_v54 = vpop.eup %1651  ;;  %v770_v56 = vrot.slane %v1650_v53, 3 }
 0x82c   :  { %972 = vrot.lane.b32.xlu0 %v971_v52, %s1719_s26  ;;  %v771_v57 = vrot.slane %v1652_v54, 2 }
 0x82e   :  { %v2236_v58 = vsel %vm219_vm5, %v771_v57, %v770_v56 }
 0x834   :  { %875 = vrot.lane.b32.xlu0 %v2236_v58, %s1718_s21 }
 0x89e   :  { %v973_v59 = vpop.permute.xlu0 %972 }
 0x8a6   :  { %v876_v1 = vpop.permute.xlu0 %875 }
 0x8ad   :  { %v870_v60 = vpop.f32.mrf.mxu3 }
 0x8ae   :  { %v873_v61 = vadd.f32 %v870_v60, %v2190_v55 }
 0x8b0   :  { %v2242_v62 = vadd.f32 %v2025_v45, %v873_v61 }
 0x8b2   :  { %1078 = vrot.lane.b32.xlu2 %v2242_v62, %s1718_s21  ;;  %v878_v0 = vsel %vm176_vm3, %v2242_v62, %v876_v1  ;;  %v930_v2 = vsel %vm176_vm3, %v2242_v62, %v928_v63 }
 0x8b3   :  { %1570 = vmatmul.msk.f32.vlgmr.msrb.gmra.mxu2 %vm275_vm9, %v878_v0  ;;  %1572 = vmatmul.msk.f32.vlgmr.msrb.gmra.mxu1 %vm178_vm4, %v930_v2 }
 0x8b4   :  { %1139 = vmatpush.msrb.mxu1 %v1866_v8  ;;  %1167 = vmatpush.msrb.mxu2 %v1932_v30 }
 0x8b6   :  { %1140 = vmatpush.msrb.mxu1 %v1872_v9  ;;  %1168 = vmatpush.msrb.mxu2 %v1938_v31 }
 0x8b8   :  { %1141 = vmatpush.msrb.mxu1 %v1878_v10  ;;  %1169 = vmatpush.msrb.mxu2 %v1944_v32 }
 0x8ba   :  { %1142 = vmatpush.msrb.mxu1 %v1883_v11  ;;  %1170 = vmatpush.msrb.mxu2 %v1951_v33 }
 0x8bc   :  { %1143 = vmatpush.msrb.mxu1 %v1889_v12 }
 0x8be   :  { %1144 = vmatpush.msrb.mxu1 %v1895_v13 }
 0x8c0   :  { %1145 = vmatpush.msrb.mxu1 %v1901_v14 }
 0x8c2   :  { %1146 = vmatpush.msrb.mxu1 %v1907_v15 }
 0x90c   :  { %v1079_v2 = vpop.permute.xlu2 %1078 }
 0x930   :  { %v951_v3 = vpop.f32.mrf.mxu1 }
 0x931   :  { %v955_v4 = vrot.slane %v951_v3, 3  ;;  %v956_v6 = vrot.slane %v951_v3, 4 }
 0x933   :  { %v959_v17 = vadd.f32 %v955_v4, %v1913_v16  ;;  %v960_v7 = vadd.f32 %v956_v6, %v1915_v18 }
 0x935   :  { %v962_v20 = vadd.f32 %v1920_v19, %v960_v7  ;;  %v961_v22 = vadd.f32 %v1920_v19, %v959_v17 }
 0x936   :  { %v899_v23 = vpop.f32.mrf.mxu2 }
 0x937   :  { %v903_v25 = vrot.slane %v899_v23, 4  ;;  %v904_v26 = vrot.slane %v899_v23, 5  ;;  %1653 = vtanh.f32 %v962_v20 }
 0x938   :  { %1655 = vtanh.f32 %v961_v22 }
 0x939   :  { %v907_v28 = vadd.f32 %v903_v25, %v2074_v21  ;;  %v908_v29 = vadd.f32 %v904_v26, %v2082_v27 }
 0x93b   :  { %v909_v35 = vadd.f32 %v2079_v24, %v907_v28  ;;  %v910_v36 = vadd.f32 %v2079_v24, %v908_v29 }
 0x93d   :  { %1657 = vtanh.f32 %v909_v35  ;;  %v1654_v37 = vpop.eup %1653 }
 0x93e   :  { %1659 = vtanh.f32 %v910_v36  ;;  %v967_v46 = vrot.slane %v1654_v37, 7  ;;  %v1656_v47 = vpop.eup %1655 }
 0x940   :  { %v969_v52 = vsel %vm968_vm14, %v967_v46, %v1656_v47 }
 0x941   :  { %v975_v53 = vsel %vm222_vm6, %v969_v52, %v973_v59 }
 0x942   :  { %v977_v56 = vrot.slane %v975_v53, 5 }
 0x943   :  { %v1658_v54 = vpop.eup %1657 }
 0x944   :  { %v1660_v57 = vpop.eup %1659  ;;  %v921_v60 = vrot.slane %v1658_v54, 4  ;;  %1573 = vmatmul.msk.f32.vlgmr.msrb.gmra.mxu3 %vm224_vm7, %v977_v56 }
 0x945   :  { %v922_v61 = vrot.slane %v1660_v57, 3  ;;  %1322 = vmatpush.msrb.mxu3 %v1932_v30 }
 0x947   :  { %v2276_v63 = vsel %vm219_vm5, %v922_v61, %v921_v60  ;;  %1323 = vmatpush.msrb.mxu3 %v1938_v31 }
 0x948   :  { %1026 = vrot.lane.b32.xlu2 %v2276_v63, %s1718_s21 }
 0x949   :  { %1324 = vmatpush.msrb.mxu3 %v1944_v32 }
 0x94b   :  { %1325 = vmatpush.msrb.mxu3 %v1951_v33 }
 0x9a2   :  { %v1027_v32 = vpop.permute.xlu2 %1026 }
 0x9c7   :  { %v997_v59 = vpop.f32.mrf.mxu3 }
 0x9c8   :  { %v998_v1 = vadd.f32 %v1968_v34, %v997_v59 }
 0x9ca   :  { %1661 = vtanh.f32 %v998_v1 }
 0x9d0   :  { %v1662_v0 = vpop.eup %1661 }
 0x9d1   :  { %1574 = vmatmul.msk.f32.vlgmr.msra.gmra.mxu1 %vm222_vm6, %v1662_v0  ;;  %v1122_v30 = vrot.slane %v1662_v0, 2 }
 0x9d3   :  { %1123 = vrot.lane.b32.xlu1 %v1122_v30, %s1719_s26 }
 0xa45   :  { %v1124_v25 = vpop.permute.xlu1 %1123 }
 0xa4e   :  { %v1021_v3 = vpop.f32.mrf.mxu1 }
 0xa4f   :  { %v1024_v4 = vadd.f32 %v1021_v3, %v2242_v62 }
 0xa51   :  { %v2288_v31 = vadd.f32 %v2025_v45, %v1024_v4 }
 0xa53   :  { %1229 = vrot.lane.b32.xlu0 %v2288_v31, %s1718_s21  ;;  %v1029_v33 = vsel %vm176_vm3, %v2288_v31, %v1027_v32  ;;  %v1081_v6 = vsel %vm176_vm3, %v2288_v31, %v1079_v2 }
 0xa54   :  { %1576 = vmatmul.msk.f32.vlgmr.msra.gmra.mxu2 %vm275_vm9, %v1029_v33  ;;  %1578 = vmatmul.msk.f32.vlgmr.msra.gmra.mxu0 %vm178_vm4, %v1081_v6 }
 0xa55   :  { %1294 = vmatpush.msra.mxu2 %v1866_v8  ;;  %1587 = vmatpush.msk.msra.mxu0 %vm279_vm8, %v1978_v39 }
 0xa57   :  { %1295 = vmatpush.msra.mxu2 %v1872_v9  ;;  %1351 = vmatpush.msra.mxu0 %v1983_v40 }
 0xa59   :  { %1296 = vmatpush.msra.mxu2 %v1878_v10  ;;  %1352 = vmatpush.msra.mxu0 %v1994_v41 }
 0xa5b   :  { %1297 = vmatpush.msra.mxu2 %v1883_v11  ;;  %1353 = vmatpush.msra.mxu0 %v2001_v42 }
 0xa5d   :  { %1298 = vmatpush.msra.mxu2 %v1889_v12  ;;  %1354 = vmatpush.msra.mxu0 %v2008_v43 }
 0xa5f   :  { %1299 = vmatpush.msra.mxu2 %v1895_v13  ;;  %v164_v13 = vld [vmem:[%s2508_s3] sm:$0x3] }
 0xa60   :  { %v1540_v17 = vadd.s32 4294967295, %v164_v13 }
 0xa61   :  { %1300 = vmatpush.msra.mxu2 %v1901_v14 }
 0xa62   :  { %vm166_vm2 = vcmp.gt.s32.totalorder %v1540_v17, 0 }
 0xa63   :  { %1301 = vmatpush.msra.mxu2 %v1907_v15  ;;  %v167_v28 = vsel %vm166_vm2, %v1540_v17, 0 }
 0xa64   :  { %vm168_vm10 = vcmp.lt.s32.totalorder %v167_v28, 7 }
 0xa65   :  { %v2328_v53 = vsel %vm168_vm10, %v167_v28, 7  ;;  %vm1280_vm10 = vcmask 1040384  }
 0xa66   :  { %vm461_vm11 = vcmp.eq.s32.totalorder %v2328_v53, 1  ;;  %vm913_vm12 = vcmp.eq.s32.totalorder %v2328_v53, 4  ;;  %vm1370_vm13 = vcmp.eq.s32.totalorder %v2328_v53, 7  ;;  %vm313_vm14 = vcmp.eq.s32.totalorder %v2328_v53, 0 }
 0xa67   :  { %v462_v54 = vsel %vm461_vm11, 1, %v1720_v44  ;;  %v914_v56 = vsel %vm913_vm12, 1, %v1720_v44  ;;  %v1371_v57 = vsel %vm1370_vm13, 1, %v1720_v44  ;;  %v314_v0 = vsel %vm313_vm14, 1, %v1720_v44 }
 0xa68   :  { %vm1215_vm2 = vcmp.eq.s32.totalorder %v2328_v53, 6  ;;  %vm1064_vm11 = vcmp.eq.s32.totalorder %v2328_v53, 5  ;;  %vm1431_vm12 = vcmask 1044480   ;;  %vm1436_vm13 = vcmask 1046528  }
 0xac5   :  { %v1230_v4 = vpop.permute.xlu0 %1229 }
 0xad1   :  { %v1102_v8 = vpop.f32.mrf.mxu0 }
 0xad2   :  { %v1106_v9 = vrot.slane %v1102_v8, 2  ;;  %v1107_v39 = vrot.slane %v1102_v8, 3 }
 0xad4   :  { %v1110_v10 = vadd.f32 %v1106_v9, %v1913_v16  ;;  %v1111_v40 = vadd.f32 %v1107_v39, %v1915_v18  ;;  %v1216_v39 = vsel %vm1215_vm2, 1, %v1720_v44 }
 0xad6   :  { %v1113_v11 = vadd.f32 %v1920_v19, %v1111_v40  ;;  %v1112_v41 = vadd.f32 %v1920_v19, %v1110_v10 }
 0xad7   :  { %v1050_v12 = vpop.f32.mrf.mxu2 }
 0xad8   :  { %v1054_v42 = vrot.slane %v1050_v12, 3  ;;  %v1055_v43 = vrot.slane %v1050_v12, 4  ;;  %1663 = vtanh.f32 %v1113_v11 }
 0xad9   :  { %1665 = vtanh.f32 %v1112_v41 }
 0xada   :  { %v1058_v14 = vadd.f32 %v1054_v42, %v2074_v21  ;;  %v1059_v15 = vadd.f32 %v1055_v43, %v2082_v27 }
 0xadc   :  { %v1060_v7 = vadd.f32 %v2079_v24, %v1058_v14  ;;  %v1061_v20 = vadd.f32 %v2079_v24, %v1059_v15  ;;  %v1687_v15 = vld [vmem:[%s2486_s6] ss:$0 sm:$0xff] }
 0xade   :  { %1667 = vtanh.f32 %v1060_v7  ;;  %v1664_v19 = vpop.eup %1663 }
 0xadf   :  { %1669 = vtanh.f32 %v1061_v20  ;;  %v1118_v22 = vrot.slane %v1664_v19, 7  ;;  %v1666_v23 = vpop.eup %1665 }
 0xae1   :  { %v1120_v26 = vsel %vm1119_vm15, %v1118_v22, %v1666_v23  ;;  %vm762_vm15 = vcmp.eq.s32.totalorder %v2328_v53, 3 }
 0xae2   :  { %v1126_v29 = vsel %vm222_vm6, %v1120_v26, %v1124_v25  ;;  %v763_v6 = vsel %vm762_vm15, 1, %v1720_v44 }
 0xae3   :  { %v1128_v36 = vrot.slane %v1126_v29, 6 }
 0xae4   :  { %v1668_v35 = vpop.eup %1667 }
 0xae5   :  { %v1670_v37 = vpop.eup %1669  ;;  %v1072_v46 = vrot.slane %v1668_v35, 5  ;;  %1579 = vmatmul.msk.f32.vlgmr.msrb.gmra.mxu1 %vm224_vm7, %v1128_v36 }
 0xae6   :  { %v1073_v47 = vrot.slane %v1670_v37, 4 }
 0xae8   :  { %v2326_v52 = vsel %vm219_vm5, %v1073_v47, %v1072_v46 }
 0xae9   :  { %1177 = vrot.lane.b32.xlu2 %v2326_v52, %s1718_s21 }
 0xaf1   :  { %464 = vperm.xlu2 %1597, %v462_v54   ;;  %v1065_v54 = vsel %vm1064_vm11, 1, %v1720_v44 }
 0xaf9   :  { %916 = vperm.xlu2 %1597, %v914_v56  }
 0xb01   :  { %1373 = vperm.xlu2 %1597, %v1371_v57   ;;  %v1688_v57 = vld [vmem:[%s2488_s8] ss:$0 sm:$0xff] }
 0xb62   :  { %v1148_v60 = vpop.f32.mrf.mxu1 }
 0xb63   :  { %v1149_v61 = vadd.f32 %v1968_v34, %v1148_v60  ;;  %v1178_v34 = vpop.permute.xlu2 %1177 }
 0xb65   :  { %1671 = vtanh.f32 %v1149_v61 }
 0xb6b   :  { %v1672_v59 = vpop.eup %1671 }
 0xb6c   :  { %1580 = vmatmul.msk.f32.vlgmr.msrb.gmra.mxu2 %vm222_vm6, %v1672_v59  ;;  %v1272_v1 = vrot.slane %v1672_v59, 1  ;;  %v1689_v59 = vld [vmem:[%s2507_s27 + $0x8] sm:$0xff] }
 0xb6e   :  { %1273 = vrot.lane.b32.xlu1 %v1272_v1, %s1719_s26  ;;  %v1441_v1 = vrot.slane %v1689_v59, 7  ;;  %v465_v59 = vpop.permute.xlu2 %464 }
 0xb76   :  { %316 = vperm.xlu1 %1599, %v314_v0   ;;  %v1385_v0 = vrot.slane %v2094_v48, 1 }
 0xb7e   :  { %765 = vperm.xlu1 %1599, %v763_v6   ;;  %v1398_v6 = vperm.slane %v2142_v50, 0 }
 0xb86   :  { %1218 = vperm.xlu1 %1599, %v1216_v39   ;;  %v1406_v39 = vperm.slane %v2242_v62, 0 }
 0xbe0   :  { %v1274_v26 = vpop.permute.xlu1 %1273 }
 0xbef   :  { %v1172_v30 = vpop.f32.mrf.mxu2 }
 0xbf0   :  { %v1175_v2 = vadd.f32 %v1172_v30, %v2288_v31  ;;  %v1386_v30 = vrot.slane %v2142_v50, 1  ;;  %v1410_v50 = vperm.slane %v2288_v31, 0 }
 0xbf2   :  { %v2345_v3 = vadd.f32 %v2025_v45, %v1175_v2  ;;  %v1387_v2 = vrot.slane %v2190_v55, 1 }
 0xbf4   :  { %v1180_v32 = vsel %vm176_vm3, %v2345_v3, %v1178_v34  ;;  %v1232_v33 = vsel %vm176_vm3, %v2345_v3, %v1230_v4  ;;  %v1394_v4 = vperm.slane %v2094_v48, 0  ;;  %v1395_v34 = vperm.slane %v1385_v0, 0 }
 0xbf5   :  { %1582 = vmatmul.msk.f32.vlgmr.msrb.gmra.mxu0 %vm275_vm9, %v1180_v32  ;;  %1584 = vmatmul.msk.f32.vlgmr.msra.gmra.mxu3 %vm178_vm4, %v1232_v33  ;;  %vm611_vm4 = vcmp.eq.s32.totalorder %v2328_v53, 2  ;;  %v1388_v32 = vrot.slane %v2242_v62, 1  ;;  %v1383_v33 = vrot.slane %v2029_v49, 1 }
 0xbf6   :  { %v612_v35 = vsel %vm611_vm4, 1, %v1720_v44  ;;  %v1690_v44 = vld [vmem:[%s2507_s27] sm:$0xff]  ;;  %v1422_v48 = vsel %vm1280_vm10, %v2029_v49, %v1394_v4  ;;  %s1722_s27 = smov [#allocation2]  }
 0xbf7   :  { %v1442_v53 = vsel %vm219_vm5, %v1441_v1, %v1690_v44 }
 0xc72   :  { %v1201_v8 = vpop.f32.mrf.mxu0 }
 0xc73   :  { %v1205_v45 = vrot.slane %v1201_v8, 2  ;;  %v1206_v9 = vrot.slane %v1201_v8, 3  ;;  %v1389_v8 = vrot.slane %v2288_v31, 1 }
 0xc75   :  { %v1209_v10 = vadd.f32 %v1205_v45, %v2074_v21  ;;  %v1210_v40 = vadd.f32 %v1206_v9, %v2082_v27  ;;  %v1399_v45 = vperm.slane %v1386_v30, 0  ;;  %v1402_v9 = vperm.slane %v2190_v55, 0 }
 0xc76   :  { %v1411_v49 = vperm.slane %v1389_v8, 0 }
 0xc77   :  { %v1211_v11 = vadd.f32 %v2079_v24, %v1209_v10  ;;  %v1212_v41 = vadd.f32 %v2079_v24, %v1210_v40  ;;  %v1391_v10 = vrot.slane %v2345_v3, 1  ;;  %v1403_v40 = vperm.slane %v1387_v2, 0 }
 0xc78   :  { %v1253_v12 = vpop.f32.mrf.mxu3 }
 0xc79   :  { %1673 = vtanh.f32 %v1211_v11  ;;  %v1257_v42 = vrot.slane %v1253_v12, 1  ;;  %v1258_v43 = vrot.slane %v1253_v12, 2 }
 0xc7a   :  { %1675 = vtanh.f32 %v1212_v41  ;;  %v1423_v41 = vsel %vm1280_vm10, %v1383_v33, %v1395_v34 }
 0xc7b   :  { %v1261_v13 = vadd.f32 %v1257_v42, %v1913_v16  ;;  %v1262_v14 = vadd.f32 %v1258_v43, %v1915_v18  ;;  %v1407_v42 = vperm.slane %v1388_v32, 0  ;;  %v1414_v43 = vperm.slane %v2345_v3, 0  ;;  %v917_v32 = vpop.permute.xlu2 %916 }
 0xc7c   :  { %vm918_vm15 = vcmp.eq.s32.totalorder %v917_v32, 1 }
 0xc7d   :  { %v1263_v17 = vadd.f32 %v1687_v15, %v1261_v13  ;;  %v1264_v7 = vadd.f32 %v1687_v15, %v1262_v14  ;;  %v1691_v14 = vld [vmem:[%s2490_s10] ss:$0 sm:$0xff]  ;;  %s1523_s10 = sshll.u32 %s1722_s27, 4  ;;  %s1524_s10 = int_to_ptr.vmem [resolvable:$true] %s1523_s10 }
 0xc7f   :  { %v1674_v20 = vpop.eup %1673  ;;  %1677 = vtanh.f32 %v1263_v17  ;;  %v1415_v17 = vperm.slane %v1391_v10, 0 }
 0xc80   :  { %v1676_v19 = vpop.eup %1675  ;;  %1679 = vtanh.f32 %v1264_v7  ;;  %v1223_v22 = vrot.slane %v1674_v20, 6 }
 0xc81   :  { %v1224_v23 = vrot.slane %v1676_v19, 5 }
 0xc83   :  { %v2367_v25 = vsel %vm219_vm5, %v1224_v23, %v1223_v22 }
 0xc84   :  { %1332 = vrot.lane.b32.xlu0 %v2367_v25, %s1718_s21 }
 0xc85   :  { %v1678_v16 = vpop.eup %1677 }
 0xc86   :  { %v1680_v18 = vpop.eup %1679  ;;  %v1276_v29 = vsel %vm222_vm6, %v1678_v16, %v1274_v26 }
 0xc87   :  { %v1269_v28 = vrot.slane %v1680_v18, 7  ;;  %v1281_v37 = vrot.slane %v1276_v29, 7 }
 0xc89   :  { %v1277_v36 = vsel %vm222_vm6, %v1269_v28, %v1274_v26 }
 0xc8a   :  { %v1282_v46 = vrot.slane %v1277_v36, 7 }
 0xc8c   :  { %614 = vperm.xlu0 %1598, %v612_v35   ;;  %v1283_v47 = vsel %vm1280_vm10, %v1281_v37, %v1282_v46  ;;  %v1451_v37 = vld [vmem:[%s2494_s14 + $0x20] sm:$0x7]  ;;  %v1450_v46 = vld [vmem:[%s2494_s14 + $0x18] sm:$0xff] }
 0xc8d   :  { %1585 = vmatmul.msk.f32.vlgmr.msra.gmra.mxu2 %vm224_vm7, %v1283_v47  ;;  %vm1424_vm7 = vcmask 1041408   ;;  %1589 = vmatpush.msk.msra.mxu1 %vm279_vm8, %v1451_v37  ;;  %v1449_v47 = vld [vmem:[%s2494_s14 + $0x10] sm:$0xff] }
 0xc8e   :  { %v1425_v55 = vsel %vm1424_vm7, %v1422_v48, %v1398_v6  ;;  %v1426_v13 = vsel %vm1424_vm7, %v1423_v41, %v1399_v45 }
 0xc8f   :  { %v1427_v62 = vsel %vm279_vm8, %v1425_v55, %v1402_v9  ;;  %v1428_v7 = vsel %vm279_vm8, %v1426_v13, %v1403_v40  ;;  %1474 = vmatpush.msra.mxu1 %v1450_v46  ;;  %v1374_v40 = vpop.permute.xlu2 %1373  ;;  %v1606_v55 = vld [vmem:[%s2497_s17] ss:$0 sm:$0xff] }
 0xc90   :  { %v1429_v20 = vsel %vm103_vm1, %v1427_v62, %v1406_v39  ;;  %v1430_v16 = vsel %vm103_vm1, %v1428_v7, %v1407_v42  ;;  %vm1375_vm4 = vcmp.eq.s32.totalorder %v1374_v40, 1 }
 0xc91   :  { %v1432_v22 = vsel %vm1431_vm12, %v1429_v20, %v1410_v50  ;;  %v1433_v28 = vsel %vm1431_vm12, %v1430_v16, %v1411_v49  ;;  %1475 = vmatpush.msra.mxu1 %v1449_v47 }
 0xc92   :  { %v1434_v18 = vsel %vm182_vm0, %v1432_v22, %v1414_v43  ;;  %v1435_v35 = vsel %vm182_vm0, %v1433_v28, %v1415_v17 }
 0xc94   :  { %1067 = vperm.xlu0 %1598, %v1065_v54   ;;  %v1448_v54 = vld [vmem:[%s2494_s14 + $0x8] sm:$0xff] }
 0xc95   :  { %1476 = vmatpush.msra.mxu1 %v1448_v54 }
 0xc9c   :  { %1443 = vrot.lane.b32.xlu0 %v1442_v53, %s1721_s30 }
 0xcf6   :  { %v1333_v31 = vpop.permute.xlu0 %1332 }
 0xcfe   :  { %v615_v1 = vpop.permute.xlu0 %614 }
 0xcff   :  { %vm616_vm1 = vcmp.eq.s32.totalorder %v615_v1, 1 }
 0xd06   :  { %v1068_v9 = vpop.permute.xlu0 %1067 }
 0xd07   :  { %vm1069_vm14 = vcmp.eq.s32.totalorder %v1068_v9, 1 }
 0xd10   :  { %v1303_v56 = vpop.f32.mrf.mxu2 }
 0xd11   :  { %v1304_v60 = vadd.f32 %v1688_v57, %v1303_v56  ;;  %v1447_v56 = vld [vmem:[%s2494_s14] sm:$0xff]  ;;  %v1486_v57 = vld [vmem:[%s2496_s16 + $0x18] sm:$0xff] }
 0xd12   :  { %1477 = vmatpush.msra.mxu1 %v1447_v56  ;;  %1506 = vmatpush.msra.mxu3 %v1486_v57 }
 0xd13   :  { %1681 = vtanh.f32 %v1304_v60  ;;  %v1485_v60 = vld [vmem:[%s2496_s16 + $0x10] sm:$0xff] }
 0xd14   :  { %1507 = vmatpush.msra.mxu3 %v1485_v60 }
 0xd19   :  { %v1682_v61 = vpop.eup %1681 }
 0xd1a   :  { %1586 = vmatmul.msk.f32.vlgmr.msrb.gmra.mxu3 %vm222_vm6, %v1682_v61  ;;  %v317_v61 = vpop.permute.xlu1 %316 }
 0xd1b   :  { %vm318_vm0 = vcmp.eq.s32.totalorder %v317_v61, 1 }
 0xd1c   :  { %v324_v2 = vsel %vm318_vm0, %v2088_v38, 0.0 }
 0xd22   :  { %v766_v53 = vpop.permute.xlu1 %765 }
 0xd23   :  { %vm767_vm8 = vcmp.eq.s32.totalorder %v766_v53, 1 }
 0xd9d   :  { %v1327_v11 = vpop.f32.mrf.mxu3 }
 0xd9e   :  { %v1330_v12 = vadd.f32 %v1327_v11, %v2345_v3 }
 0xda0   :  { %v1331_v15 = vadd.f32 %v1691_v14, %v1330_v12 }
 0xda2   :  { %v1393_v19 = vrot.slane %v1331_v15, 1  ;;  %v1418_v3 = vperm.slane %v1331_v15, 0  ;;  %v1335_v23 = vsel %vm176_vm3, %v1331_v15, %v1333_v31 }
 0xda3   :  { %1588 = vmatmul.msk.f32.vlgmr.msra.gmra.mxu0 %vm275_vm9, %v1335_v23 }
 0xda4   :  { %v1419_v26 = vperm.slane %v1393_v19, 0  ;;  %v1437_v29 = vsel %vm1436_vm13, %v1434_v18, %v1418_v3 }
 0xda5   :  { %1439 = vst.msk [vmem:[%s2498_s18] sm:$0xff] %vm176_vm3, %v1437_v29 }
 0xda6   :  { %v1438_v36 = vsel %vm1436_vm13, %v1435_v35, %v1419_v26 }
 0xda7   :  { %1440 = vst.msk [vmem:[%s2498_s18 + $0x8] sm:$0xff] %vm176_vm3, %v1438_v36  ;;  %vm466_vm3 = vcmp.eq.s32.totalorder %v465_v59, 1 }
 0xda8   :  { %v472_v8 = vsel %vm466_vm3, %v2131_v5, %v324_v2 }
 0xda9   :  { %v623_v45 = vsel %vm616_vm1, %v2184_v51, %v472_v8  ;;  %v1444_v51 = vpop.permute.xlu0 %1443 }
 0xdaa   :  { %v774_v38 = vsel %vm767_vm8, %v2236_v58, %v623_v45 }
 0xdab   :  { %v925_v39 = vsel %vm918_vm15, %v2276_v63, %v774_v38  ;;  %v1484_v63 = vld [vmem:[%s2496_s16 + $0x8] sm:$0xff] }
 0xdac   :  { %1508 = vmatpush.msra.mxu3 %v1484_v63 }
 0xe20   :  { %v1356_v44 = vpop.f32.mrf.mxu0 }
 0xe21   :  { %v1360_v0 = vrot.slane %v1356_v44, 1  ;;  %v1361_v30 = vrot.slane %v1356_v44, 2 }
 0xe23   :  { %v1364_v4 = vadd.f32 %v1360_v0, %v2074_v21  ;;  %v1365_v34 = vadd.f32 %v1361_v30, %v2082_v27  ;;  %v1219_v21 = vpop.permute.xlu1 %1218 }
 0xe24   :  { %vm1220_vm2 = vcmp.eq.s32.totalorder %v1219_v21, 1 }
 0xe25   :  { %v1366_v33 = vadd.f32 %v2079_v24, %v1364_v4  ;;  %v1367_v6 = vadd.f32 %v2079_v24, %v1365_v34  ;;  %v1076_v24 = vsel %vm1069_vm14, %v2326_v52, %v925_v39  ;;  %v1483_v52 = vld [vmem:[%s2496_s16] sm:$0xff]  ;;  %s1525_s16 = sshll.u32 %s2499_s19, 4  ;;  %s1526_s16 = int_to_ptr.hbm [resolvable:$true] %s1525_s16 }
 0xe26   :  { %v1227_v48 = vsel %vm1220_vm2, %v2367_v25, %v1076_v24  ;;  %1509 = vmatpush.msra.mxu3 %v1483_v52  ;;  %v1605_v25 = vld [vmem:[%s2495_s15] ss:$0 sm:$0xff] }
 0xe27   :  { %1683 = vtanh.f32 %v1366_v33 }
 0xe28   :  { %1685 = vtanh.f32 %v1367_v6 }
 0xe2d   :  { %v1684_v27 = vpop.eup %1683 }
 0xe2e   :  { %v1686_v10 = vpop.eup %1685  ;;  %v1378_v5 = vrot.slane %v1684_v27, 7 }
 0xe2f   :  { %v1379_v11 = vrot.slane %v1686_v10, 6 }
 0xe31   :  { %v1380_v41 = vsel %vm219_vm5, %v1379_v11, %v1378_v5  ;;  %vm1514_vm5 = vcmask 41984  }
 0xe32   :  { %v1382_v58 = vsel %vm1375_vm4, %v1380_v41, %v1227_v48 }
 0xe33   :  { %v1446_v12 = vsel %vm222_vm6, %v1382_v58, %v1444_v51 }
 0xe34   :  { %1590 = vmatmul.msk.f32.vlgmr.msra.gmra.mxu1 %vm275_vm9, %v1446_v12 }
 0xeb1   :  { %v1479_v50 = vpop.f32.mrf.mxu1 }
 0xeb2   :  { %v1480_v42 = vadd.f32 %v1605_v25, %v1479_v50 }
 0xeb4   :  { %v1482_v43 = vmax.f32 %v1480_v42, 0.0 }
 0xeb6   :  { %1591 = vmatmul.msk.f32.vlgmr.msra.gmra.mxu3 %vm222_vm6, %v1482_v43 }
 0xf39   :  { %v1511_v13 = vpop.f32.mrf.mxu3 }
 0xf3a   :  { %v1512_v62 = vadd.f32 %v1606_v55, %v1511_v13 }
 0xf3c   :  { %1515 = vst.msk [vmem:[#allocation2] sm:$0x3] %vm1514_vm5, %v1512_v62 }
 0xf3d   :  { %1528 = dma.vmem_to_hbm [thread:$0]  %s1524_s10, 32, %s1526_s16, [#allocation3]  }
 0xf3e   :  { %1716 = dma.done.wait [#allocation3], 32  }
 0xf3f   :  { %1717 = vsyncadd [#allocation3], 4294967264 }
 0xf40   :  { %1535 = vsyncpa [#allocation3], 1 }

</bundles_post_ra>
